<compile_context>
chip_gen: v7x
topology: tpu7x:2x2x1
jax: 0.10.0
libtpu: 0.0.40
codegen_flags: <defaults>
</compile_context>

<pallas_src>
from functools import partial

import jax
import jax.numpy as jnp
from jax.experimental import pallas as pl
from jax.experimental.pallas import tpu as pltpu


def attention_kernel(xq_ref, xkv_ref, wq_ref, wk_ref, wv_ref, wproj_ref,
                     bproj_ref, o_ref, o_acc, *, num_heads):
    # xq_ref : (1, TQ, C) bf16  -- query tile of the current batch element
    # xkv_ref: (1, N,  C) bf16  -- full sequence of the current batch element
    # wq_ref : (C, C) bf16      -- Q weight with the attention scale pre-folded
    # wk_ref : (C, C) bf16      -- K weight
    # wv_ref : (C, C) bf16      -- V weight
    # wproj  : (C, C) bf16, bproj: (1, C) f32
    # o_acc  : (TQ, C) f32 VMEM scratch slab for the per-head outputs
    xq = xq_ref[0]                                             # (TQ, C)
    xkv = xkv_ref[0]                                           # (N, C)

    C = xq.shape[-1]
    hd = C // num_heads

    # Projections on the MXU: bf16 operands, f32 accumulation, bf16 results.
    q = jnp.dot(xq, wq_ref[...],
                preferred_element_type=jnp.float32).astype(jnp.bfloat16)   # (TQ, C)
    k = jnp.dot(xkv, wk_ref[...],
                preferred_element_type=jnp.float32).astype(jnp.bfloat16)   # (N, C)
    v = jnp.dot(xkv, wv_ref[...],
                preferred_element_type=jnp.float32).astype(jnp.bfloat16)   # (N, C)

    # Per-head attention.  Each head's output is stored immediately into the
    # (TQ, C) VMEM slab, so there is no concatenate and no pile-up of
    # simultaneously-live head outputs.
    for h in range(num_heads):
        lo, hi = h * hd, (h + 1) * hd
        qh = q[:, lo:hi]                                       # (TQ, hd) bf16
        kh = k[:, lo:hi]                                       # (N,  hd) bf16
        vh = v[:, lo:hi]                                       # (N,  hd) bf16

        # q @ k^T with the transpose absorbed into the MXU contraction.
        s = jax.lax.dot_general(qh, kh, (((1,), (1,)), ((), ())),
                                preferred_element_type=jnp.float32)        # (TQ, N)

        # Numerically-stable softmax in f32 (matches torch.softmax); the row
        # reciprocal goes to the EUP (approx=True).  attn_drop(p=0) = identity.
        s = s - jnp.max(s, axis=-1, keepdims=True)
        p = jnp.exp(s)
        p = p * pl.reciprocal(jnp.sum(p, axis=-1, keepdims=True), approx=True)

        o_acc[:, lo:hi] = jnp.dot(p.astype(jnp.bfloat16), vh,
                                  preferred_element_type=jnp.float32)      # (TQ, hd)

    # Output projection (one lane-dense matmul from the slab) + bias.
    # proj_drop(p=0) is identity.
    out = jnp.dot(o_acc[...].astype(jnp.bfloat16), wproj_ref[...],
                  preferred_element_type=jnp.float32) + bproj_ref[...]
    o_ref[0] = out.astype(o_ref.dtype)


def _pick_q_tile(n, max_tile=256):
    """Largest multiple-of-8 divisor of n that is <= max_tile; fall back to n."""
    if n <= max_tile:
        return n
    for t in range(max_tile, 7, -1):
        if n % t == 0 and t % 8 == 0:
            return t
    return n  # no aligned divisor -> monolithic (full-N) query tile


def attention_forward(x, wqkv, wproj, bproj, *, num_heads, q_tile=None):
    """x: (B, N, C) f32; wqkv: (C, 3C); wproj: (C, C); bproj: (1, C).

    Weights are in math layout (in, out), i.e. the kernel computes x @ W
    (equivalent to nn.Linear's x @ W.T).
    """
    B, N, C = x.shape
    hd = C // num_heads
    scale = hd ** -0.5

    # Trace-time weight prep: fold the attention scale into the Q weight,
    # split Q / K / V, and cast MXU operands to bf16.
    wq = (wqkv[:, :C] * scale).astype(jnp.bfloat16)          # (C, C)
    wk = wqkv[:, C:2 * C].astype(jnp.bfloat16)               # (C, C)
    wv = wqkv[:, 2 * C:].astype(jnp.bfloat16)                # (C, C)
    wproj_b = wproj.astype(jnp.bfloat16)                     # (C, C)
    bproj_f = bproj.astype(jnp.float32)                      # (1, C)
    xb = x.astype(jnp.bfloat16)

    TQ = q_tile or _pick_q_tile(N)
    assert N % TQ == 0, "query tile must divide N"
    grid = (B, N // TQ)

    kernel = partial(attention_kernel, num_heads=num_heads)
    return pl.pallas_call(
        kernel,
        out_shape=jax.ShapeDtypeStruct((B, N, C), jnp.float32),
        grid=grid,
        in_specs=[
            pl.BlockSpec((1, TQ, C), lambda b, t: (b, t, 0)),   # query tile of x
            pl.BlockSpec((1, N, C), lambda b, t: (b, 0, 0)),    # full seq (K/V source)
            pl.BlockSpec((C, C), lambda b, t: (0, 0)),          # wq (scale folded)
            pl.BlockSpec((C, C), lambda b, t: (0, 0)),          # wk
            pl.BlockSpec((C, C), lambda b, t: (0, 0)),          # wv
            pl.BlockSpec((C, C), lambda b, t: (0, 0)),          # wproj
            pl.BlockSpec((1, C), lambda b, t: (0, 0)),          # proj bias
        ],
        out_specs=pl.BlockSpec((1, TQ, C), lambda b, t: (b, t, 0)),
        scratch_shapes=[pltpu.VMEM((TQ, C), jnp.float32)],      # per-head output slab
        compiler_params=pltpu.CompilerParams(
            dimension_semantics=("parallel", "parallel")),
    )(xb, xb, wq, wk, wv, wproj_b, bproj_f)


def attention_reference(x, wqkv, wproj, bproj, *, num_heads):
    """Pure-JAX f32 reference mirroring the PyTorch forward."""
    B, N, C = x.shape
    hd = C // num_heads
    scale = hd ** -0.5
    qkv = jnp.einsum("bnc,cd->bnd", x, wqkv)                        # (B, N, 3C)
    qkv = qkv.reshape(B, N, 3, num_heads, hd).transpose(2, 0, 3, 1, 4)
    q, k, v = qkv[0], qkv[1], qkv[2]                                # (B, H, N, hd)
    attn = jnp.einsum("bhnd,bhmd->bhnm", q, k) * scale
    attn = jax.nn.softmax(attn, axis=-1)
    o = jnp.einsum("bhnm,bhmd->bhnd", attn, v)                      # (B, H, N, hd)
    o = o.transpose(0, 2, 1, 3).reshape(B, N, C)
    return jnp.einsum("bnc,cd->bnd", o, wproj) + bproj[0]


if __name__ == "__main__":
    # Small shapes consistent with the module: B=2, N=8 tokens, C=32 dim, 8 heads.
    B, N, C, H = 2, 8, 32, 8

    key = jax.random.PRNGKey(0)
    kx, kq, kp, kb = jax.random.split(key, 4)
    x = jax.random.normal(kx, (B, N, C), dtype=jnp.float32)
    # nn.Linear shapes: qkv C->3C (no bias), proj C->C (with bias), math layout (in, out).
    wqkv = jax.random.normal(kq, (C, 3 * C), dtype=jnp.float32) * (C ** -0.5)
    wproj = jax.random.normal(kp, (C, C), dtype=jnp.float32) * (C ** -0.5)
    bproj = jax.random.normal(kb, (1, C), dtype=jnp.float32) * 0.02

    out = attention_forward(x, wqkv, wproj, bproj, num_heads=H)
    jax.block_until_ready(out)

    ref = attention_reference(x, wqkv, wproj, bproj, num_heads=H)
    assert out.shape == (B, N, C)
    # bf16 MXU operands + approx reciprocal vs. a pure-f32 reference.
    assert jnp.allclose(out, ref, atol=5e-2, rtol=5e-2), "mismatch vs reference"

    print("KERNEL_OK")
</pallas_src>

<mosaic_0001>
module attributes {stable_mosaic.version = 11 : i64} {
  func.func @attention_kernel(%arg0: i32, %arg1: i32, %arg2: memref<1x8x32xbf16, #tpu.memory_space<vmem>>, %arg3: memref<1x8x32xbf16, #tpu.memory_space<vmem>>, %arg4: memref<32x32xbf16, #tpu.memory_space<vmem>>, %arg5: memref<32x32xbf16, #tpu.memory_space<vmem>>, %arg6: memref<32x32xbf16, #tpu.memory_space<vmem>>, %arg7: memref<32x32xbf16, #tpu.memory_space<vmem>>, %arg8: memref<1x32xf32, #tpu.memory_space<vmem>>, %arg9: memref<1x8x32xf32, #tpu.memory_space<vmem>>, %arg10: memref<8x32xf32, #tpu.memory_space<vmem>>) attributes {dimension_semantics = [#tpu.dimension_semantics<parallel>, #tpu.dimension_semantics<parallel>], iteration_bounds = array<i64: 2, 1>, scalar_prefetch = 0 : i64, scratch_operands = 1 : i64, tpu.core_type = #tpu.core_type<tc>, window_params = [{transform_indices = @transform_0, window_bounds = array<i64: 1, 8, 32>}, {transform_indices = @transform_1, window_bounds = array<i64: 1, 8, 32>}, {pipeline_mode = #tpu.pipeline_mode<synchronous>, transform_indices = @transform_2, window_bounds = array<i64: 32, 32>}, {pipeline_mode = #tpu.pipeline_mode<synchronous>, transform_indices = @transform_3, window_bounds = array<i64: 32, 32>}, {pipeline_mode = #tpu.pipeline_mode<synchronous>, transform_indices = @transform_4, window_bounds = array<i64: 32, 32>}, {pipeline_mode = #tpu.pipeline_mode<synchronous>, transform_indices = @transform_5, window_bounds = array<i64: 32, 32>}, {pipeline_mode = #tpu.pipeline_mode<synchronous>, transform_indices = @transform_6, window_bounds = array<i64: 1, 32>}, {transform_indices = @transform_7, window_bounds = array<i64: 1, 8, 32>}]} {
    %c0 = arith.constant 0 : index
    %c0_0 = arith.constant 0 : index
    %c0_1 = arith.constant 0 : index
    %0 = vector.load %arg2[%c0, %c0_0, %c0_1] : memref<1x8x32xbf16, #tpu.memory_space<vmem>>, vector<1x8x32xbf16>
    %1 = vector.shape_cast %0 : vector<1x8x32xbf16> to vector<8x32xbf16>
    %c0_2 = arith.constant 0 : index
    %c0_3 = arith.constant 0 : index
    %c0_4 = arith.constant 0 : index
    %2 = vector.load %arg3[%c0_2, %c0_3, %c0_4] : memref<1x8x32xbf16, #tpu.memory_space<vmem>>, vector<1x8x32xbf16>
    %3 = vector.shape_cast %2 : vector<1x8x32xbf16> to vector<8x32xbf16>
    %c0_5 = arith.constant 0 : index
    %c0_6 = arith.constant 0 : index
    %4 = vector.load %arg4[%c0_5, %c0_6] : memref<32x32xbf16, #tpu.memory_space<vmem>>, vector<32x32xbf16>
    %cst = arith.constant dense<0.000000e+00> : vector<8x32xf32>
    %5 = tpu.matmul %1, %4, %cst {dimension_numbers = #tpu.dot_dimension_numbers<[1], [0], [0], [1], [0, 0, 1, 1], [], []>} : vector<8x32xbf16>, vector<32x32xbf16>, vector<8x32xf32> -> vector<8x32xf32>
    %6 = arith.truncf %5 : vector<8x32xf32> to vector<8x32xbf16>
    %c0_7 = arith.constant 0 : index
    %c0_8 = arith.constant 0 : index
    %7 = vector.load %arg5[%c0_7, %c0_8] : memref<32x32xbf16, #tpu.memory_space<vmem>>, vector<32x32xbf16>
    %cst_9 = arith.constant dense<0.000000e+00> : vector<8x32xf32>
    %8 = tpu.matmul %3, %7, %cst_9 {dimension_numbers = #tpu.dot_dimension_numbers<[1], [0], [0], [1], [0, 0, 1, 1], [], []>} : vector<8x32xbf16>, vector<32x32xbf16>, vector<8x32xf32> -> vector<8x32xf32>
    %9 = arith.truncf %8 : vector<8x32xf32> to vector<8x32xbf16>
    %c0_10 = arith.constant 0 : index
    %c0_11 = arith.constant 0 : index
    %10 = vector.load %arg6[%c0_10, %c0_11] : memref<32x32xbf16, #tpu.memory_space<vmem>>, vector<32x32xbf16>
    %cst_12 = arith.constant dense<0.000000e+00> : vector<8x32xf32>
    %11 = tpu.matmul %3, %10, %cst_12 {dimension_numbers = #tpu.dot_dimension_numbers<[1], [0], [0], [1], [0, 0, 1, 1], [], []>} : vector<8x32xbf16>, vector<32x32xbf16>, vector<8x32xf32> -> vector<8x32xf32>
    %12 = arith.truncf %11 : vector<8x32xf32> to vector<8x32xbf16>
    %13 = vector.extract_strided_slice %6 {offsets = [0, 0], sizes = [8, 4], strides = [1, 1]} : vector<8x32xbf16> to vector<8x4xbf16>
    %14 = vector.extract_strided_slice %9 {offsets = [0, 0], sizes = [8, 4], strides = [1, 1]} : vector<8x32xbf16> to vector<8x4xbf16>
    %15 = vector.extract_strided_slice %12 {offsets = [0, 0], sizes = [8, 4], strides = [1, 1]} : vector<8x32xbf16> to vector<8x4xbf16>
    %cst_13 = arith.constant dense<0.000000e+00> : vector<8x8xf32>
    %16 = tpu.matmul %13, %14, %cst_13 {dimension_numbers = #tpu.dot_dimension_numbers<[1], [1], [0], [0], [0, 0, 1, 0], [], []>} : vector<8x4xbf16>, vector<8x4xbf16>, vector<8x8xf32> -> vector<8x8xf32>
    %cst_14 = arith.constant dense<0xFF800000> : vector<8xf32>
    %17 = vector.multi_reduction <maximumf>, %16, %cst_14 [1] : vector<8x8xf32> to vector<8xf32>
    %18 = vector.shape_cast %17 : vector<8xf32> to vector<8x1xf32>
    %19 = vector.broadcast %18 : vector<8x1xf32> to vector<8x8xf32>
    %20 = arith.subf %16, %19 : vector<8x8xf32>
    %21 = math.exp %20 : vector<8x8xf32>
    %cst_15 = arith.constant dense<0.000000e+00> : vector<8xf32>
    %22 = vector.multi_reduction <add>, %21, %cst_15 [1] : vector<8x8xf32> to vector<8xf32>
    %23 = vector.shape_cast %22 : vector<8xf32> to vector<8x1xf32>
    %24 = tpu.reciprocal %23 {approx = true} : vector<8x1xf32> -> vector<8x1xf32>
    %25 = vector.broadcast %24 : vector<8x1xf32> to vector<8x8xf32>
    %26 = arith.mulf %21, %25 : vector<8x8xf32>
    %27 = arith.truncf %26 : vector<8x8xf32> to vector<8x8xbf16>
    %cst_16 = arith.constant dense<0.000000e+00> : vector<8x4xf32>
    %28 = tpu.matmul %27, %15, %cst_16 {dimension_numbers = #tpu.dot_dimension_numbers<[1], [0], [0], [1], [0, 0, 1, 1], [], []>} : vector<8x8xbf16>, vector<8x4xbf16>, vector<8x4xf32> -> vector<8x4xf32>
    %c0_17 = arith.constant 0 : index
    %c0_18 = arith.constant 0 : index
    %29 = vector.load %arg10[%c0_17, %c0_18] : memref<8x32xf32, #tpu.memory_space<vmem>>, vector<8x4xf32>
    tpu.vector_store %arg10[%c0_17, %c0_18], %28 {strides = array<i32>} : memref<8x32xf32, #tpu.memory_space<vmem>>, vector<8x4xf32>,
    %30 = vector.extract_strided_slice %6 {offsets = [0, 4], sizes = [8, 4], strides = [1, 1]} : vector<8x32xbf16> to vector<8x4xbf16>
    %31 = vector.extract_strided_slice %9 {offsets = [0, 4], sizes = [8, 4], strides = [1, 1]} : vector<8x32xbf16> to vector<8x4xbf16>
    %32 = vector.extract_strided_slice %12 {offsets = [0, 4], sizes = [8, 4], strides = [1, 1]} : vector<8x32xbf16> to vector<8x4xbf16>
    %cst_19 = arith.constant dense<0.000000e+00> : vector<8x8xf32>
    %33 = tpu.matmul %30, %31, %cst_19 {dimension_numbers = #tpu.dot_dimension_numbers<[1], [1], [0], [0], [0, 0, 1, 0], [], []>} : vector<8x4xbf16>, vector<8x4xbf16>, vector<8x8xf32> -> vector<8x8xf32>
    %cst_20 = arith.constant dense<0xFF800000> : vector<8xf32>
    %34 = vector.multi_reduction <maximumf>, %33, %cst_20 [1] : vector<8x8xf32> to vector<8xf32>
    %35 = vector.shape_cast %34 : vector<8xf32> to vector<8x1xf32>
    %36 = vector.broadcast %35 : vector<8x1xf32> to vector<8x8xf32>
    %37 = arith.subf %33, %36 : vector<8x8xf32>
    %38 = math.exp %37 : vector<8x8xf32>
    %cst_21 = arith.constant dense<0.000000e+00> : vector<8xf32>
    %39 = vector.multi_reduction <add>, %38, %cst_21 [1] : vector<8x8xf32> to vector<8xf32>
    %40 = vector.shape_cast %39 : vector<8xf32> to vector<8x1xf32>
    %41 = tpu.reciprocal %40 {approx = true} : vector<8x1xf32> -> vector<8x1xf32>
    %42 = vector.broadcast %41 : vector<8x1xf32> to vector<8x8xf32>
    %43 = arith.mulf %38, %42 : vector<8x8xf32>
    %44 = arith.truncf %43 : vector<8x8xf32> to vector<8x8xbf16>
    %cst_22 = arith.constant dense<0.000000e+00> : vector<8x4xf32>
    %45 = tpu.matmul %44, %32, %cst_22 {dimension_numbers = #tpu.dot_dimension_numbers<[1], [0], [0], [1], [0, 0, 1, 1], [], []>} : vector<8x8xbf16>, vector<8x4xbf16>, vector<8x4xf32> -> vector<8x4xf32>
    %c0_23 = arith.constant 0 : index
    %c4 = arith.constant 4 : index
    %46 = vector.load %arg10[%c0_23, %c4] : memref<8x32xf32, #tpu.memory_space<vmem>>, vector<8x4xf32>
    tpu.vector_store %arg10[%c0_23, %c4], %45 {strides = array<i32>} : memref<8x32xf32, #tpu.memory_space<vmem>>, vector<8x4xf32>,
    %47 = vector.extract_strided_slice %6 {offsets = [0, 8], sizes = [8, 4], strides = [1, 1]} : vector<8x32xbf16> to vector<8x4xbf16>
    %48 = vector.extract_strided_slice %9 {offsets = [0, 8], sizes = [8, 4], strides = [1, 1]} : vector<8x32xbf16> to vector<8x4xbf16>
    %49 = vector.extract_strided_slice %12 {offsets = [0, 8], sizes = [8, 4], strides = [1, 1]} : vector<8x32xbf16> to vector<8x4xbf16>
    %cst_24 = arith.constant dense<0.000000e+00> : vector<8x8xf32>
    %50 = tpu.matmul %47, %48, %cst_24 {dimension_numbers = #tpu.dot_dimension_numbers<[1], [1], [0], [0], [0, 0, 1, 0], [], []>} : vector<8x4xbf16>, vector<8x4xbf16>, vector<8x8xf32> -> vector<8x8xf32>
    %cst_25 = arith.constant dense<0xFF800000> : vector<8xf32>
    %51 = vector.multi_reduction <maximumf>, %50, %cst_25 [1] : vector<8x8xf32> to vector<8xf32>
    %52 = vector.shape_cast %51 : vector<8xf32> to vector<8x1xf32>
    %53 = vector.broadcast %52 : vector<8x1xf32> to vector<8x8xf32>
    %54 = arith.subf %50, %53 : vector<8x8xf32>
    %55 = math.exp %54 : vector<8x8xf32>
    %cst_26 = arith.constant dense<0.000000e+00> : vector<8xf32>
    %56 = vector.multi_reduction <add>, %55, %cst_26 [1] : vector<8x8xf32> to vector<8xf32>
    %57 = vector.shape_cast %56 : vector<8xf32> to vector<8x1xf32>
    %58 = tpu.reciprocal %57 {approx = true} : vector<8x1xf32> -> vector<8x1xf32>
    %59 = vector.broadcast %58 : vector<8x1xf32> to vector<8x8xf32>
    %60 = arith.mulf %55, %59 : vector<8x8xf32>
    %61 = arith.truncf %60 : vector<8x8xf32> to vector<8x8xbf16>
    %cst_27 = arith.constant dense<0.000000e+00> : vector<8x4xf32>
    %62 = tpu.matmul %61, %49, %cst_27 {dimension_numbers = #tpu.dot_dimension_numbers<[1], [0], [0], [1], [0, 0, 1, 1], [], []>} : vector<8x8xbf16>, vector<8x4xbf16>, vector<8x4xf32> -> vector<8x4xf32>
    %c0_28 = arith.constant 0 : index
    %c8 = arith.constant 8 : index
    %63 = vector.load %arg10[%c0_28, %c8] : memref<8x32xf32, #tpu.memory_space<vmem>>, vector<8x4xf32>
    tpu.vector_store %arg10[%c0_28, %c8], %62 {strides = array<i32>} : memref<8x32xf32, #tpu.memory_space<vmem>>, vector<8x4xf32>,
    %64 = vector.extract_strided_slice %6 {offsets = [0, 12], sizes = [8, 4], strides = [1, 1]} : vector<8x32xbf16> to vector<8x4xbf16>
    %65 = vector.extract_strided_slice %9 {offsets = [0, 12], sizes = [8, 4], strides = [1, 1]} : vector<8x32xbf16> to vector<8x4xbf16>
    %66 = vector.extract_strided_slice %12 {offsets = [0, 12], sizes = [8, 4], strides = [1, 1]} : vector<8x32xbf16> to vector<8x4xbf16>
    %cst_29 = arith.constant dense<0.000000e+00> : vector<8x8xf32>
    %67 = tpu.matmul %64, %65, %cst_29 {dimension_numbers = #tpu.dot_dimension_numbers<[1], [1], [0], [0], [0, 0, 1, 0], [], []>} : vector<8x4xbf16>, vector<8x4xbf16>, vector<8x8xf32> -> vector<8x8xf32>
    %cst_30 = arith.constant dense<0xFF800000> : vector<8xf32>
    %68 = vector.multi_reduction <maximumf>, %67, %cst_30 [1] : vector<8x8xf32> to vector<8xf32>
    %69 = vector.shape_cast %68 : vector<8xf32> to vector<8x1xf32>
    %70 = vector.broadcast %69 : vector<8x1xf32> to vector<8x8xf32>
    %71 = arith.subf %67, %70 : vector<8x8xf32>
    %72 = math.exp %71 : vector<8x8xf32>
    %cst_31 = arith.constant dense<0.000000e+00> : vector<8xf32>
    %73 = vector.multi_reduction <add>, %72, %cst_31 [1] : vector<8x8xf32> to vector<8xf32>
    %74 = vector.shape_cast %73 : vector<8xf32> to vector<8x1xf32>
    %75 = tpu.reciprocal %74 {approx = true} : vector<8x1xf32> -> vector<8x1xf32>
    %76 = vector.broadcast %75 : vector<8x1xf32> to vector<8x8xf32>
    %77 = arith.mulf %72, %76 : vector<8x8xf32>
    %78 = arith.truncf %77 : vector<8x8xf32> to vector<8x8xbf16>
    %cst_32 = arith.constant dense<0.000000e+00> : vector<8x4xf32>
    %79 = tpu.matmul %78, %66, %cst_32 {dimension_numbers = #tpu.dot_dimension_numbers<[1], [0], [0], [1], [0, 0, 1, 1], [], []>} : vector<8x8xbf16>, vector<8x4xbf16>, vector<8x4xf32> -> vector<8x4xf32>
    %c0_33 = arith.constant 0 : index
    %c12 = arith.constant 12 : index
    %80 = vector.load %arg10[%c0_33, %c12] : memref<8x32xf32, #tpu.memory_space<vmem>>, vector<8x4xf32>
    tpu.vector_store %arg10[%c0_33, %c12], %79 {strides = array<i32>} : memref<8x32xf32, #tpu.memory_space<vmem>>, vector<8x4xf32>,
    %81 = vector.extract_strided_slice %6 {offsets = [0, 16], sizes = [8, 4], strides = [1, 1]} : vector<8x32xbf16> to vector<8x4xbf16>
    %82 = vector.extract_strided_slice %9 {offsets = [0, 16], sizes = [8, 4], strides = [1, 1]} : vector<8x32xbf16> to vector<8x4xbf16>
    %83 = vector.extract_strided_slice %12 {offsets = [0, 16], sizes = [8, 4], strides = [1, 1]} : vector<8x32xbf16> to vector<8x4xbf16>
    %cst_34 = arith.constant dense<0.000000e+00> : vector<8x8xf32>
    %84 = tpu.matmul %81, %82, %cst_34 {dimension_numbers = #tpu.dot_dimension_numbers<[1], [1], [0], [0], [0, 0, 1, 0], [], []>} : vector<8x4xbf16>, vector<8x4xbf16>, vector<8x8xf32> -> vector<8x8xf32>
    %cst_35 = arith.constant dense<0xFF800000> : vector<8xf32>
    %85 = vector.multi_reduction <maximumf>, %84, %cst_35 [1] : vector<8x8xf32> to vector<8xf32>
    %86 = vector.shape_cast %85 : vector<8xf32> to vector<8x1xf32>
    %87 = vector.broadcast %86 : vector<8x1xf32> to vector<8x8xf32>
    %88 = arith.subf %84, %87 : vector<8x8xf32>
    %89 = math.exp %88 : vector<8x8xf32>
    %cst_36 = arith.constant dense<0.000000e+00> : vector<8xf32>
    %90 = vector.multi_reduction <add>, %89, %cst_36 [1] : vector<8x8xf32> to vector<8xf32>
    %91 = vector.shape_cast %90 : vector<8xf32> to vector<8x1xf32>
    %92 = tpu.reciprocal %91 {approx = true} : vector<8x1xf32> -> vector<8x1xf32>
    %93 = vector.broadcast %92 : vector<8x1xf32> to vector<8x8xf32>
    %94 = arith.mulf %89, %93 : vector<8x8xf32>
    %95 = arith.truncf %94 : vector<8x8xf32> to vector<8x8xbf16>
    %cst_37 = arith.constant dense<0.000000e+00> : vector<8x4xf32>
    %96 = tpu.matmul %95, %83, %cst_37 {dimension_numbers = #tpu.dot_dimension_numbers<[1], [0], [0], [1], [0, 0, 1, 1], [], []>} : vector<8x8xbf16>, vector<8x4xbf16>, vector<8x4xf32> -> vector<8x4xf32>
    %c0_38 = arith.constant 0 : index
    %c16 = arith.constant 16 : index
    %97 = vector.load %arg10[%c0_38, %c16] : memref<8x32xf32, #tpu.memory_space<vmem>>, vector<8x4xf32>
    tpu.vector_store %arg10[%c0_38, %c16], %96 {strides = array<i32>} : memref<8x32xf32, #tpu.memory_space<vmem>>, vector<8x4xf32>,
    %98 = vector.extract_strided_slice %6 {offsets = [0, 20], sizes = [8, 4], strides = [1, 1]} : vector<8x32xbf16> to vector<8x4xbf16>
    %99 = vector.extract_strided_slice %9 {offsets = [0, 20], sizes = [8, 4], strides = [1, 1]} : vector<8x32xbf16> to vector<8x4xbf16>
    %100 = vector.extract_strided_slice %12 {offsets = [0, 20], sizes = [8, 4], strides = [1, 1]} : vector<8x32xbf16> to vector<8x4xbf16>
    %cst_39 = arith.constant dense<0.000000e+00> : vector<8x8xf32>
    %101 = tpu.matmul %98, %99, %cst_39 {dimension_numbers = #tpu.dot_dimension_numbers<[1], [1], [0], [0], [0, 0, 1, 0], [], []>} : vector<8x4xbf16>, vector<8x4xbf16>, vector<8x8xf32> -> vector<8x8xf32>
    %cst_40 = arith.constant dense<0xFF800000> : vector<8xf32>
    %102 = vector.multi_reduction <maximumf>, %101, %cst_40 [1] : vector<8x8xf32> to vector<8xf32>
    %103 = vector.shape_cast %102 : vector<8xf32> to vector<8x1xf32>
    %104 = vector.broadcast %103 : vector<8x1xf32> to vector<8x8xf32>
    %105 = arith.subf %101, %104 : vector<8x8xf32>
    %106 = math.exp %105 : vector<8x8xf32>
    %cst_41 = arith.constant dense<0.000000e+00> : vector<8xf32>
    %107 = vector.multi_reduction <add>, %106, %cst_41 [1] : vector<8x8xf32> to vector<8xf32>
    %108 = vector.shape_cast %107 : vector<8xf32> to vector<8x1xf32>
    %109 = tpu.reciprocal %108 {approx = true} : vector<8x1xf32> -> vector<8x1xf32>
    %110 = vector.broadcast %109 : vector<8x1xf32> to vector<8x8xf32>
    %111 = arith.mulf %106, %110 : vector<8x8xf32>
    %112 = arith.truncf %111 : vector<8x8xf32> to vector<8x8xbf16>
    %cst_42 = arith.constant dense<0.000000e+00> : vector<8x4xf32>
    %113 = tpu.matmul %112, %100, %cst_42 {dimension_numbers = #tpu.dot_dimension_numbers<[1], [0], [0], [1], [0, 0, 1, 1], [], []>} : vector<8x8xbf16>, vector<8x4xbf16>, vector<8x4xf32> -> vector<8x4xf32>
    %c0_43 = arith.constant 0 : index
    %c20 = arith.constant 20 : index
    %114 = vector.load %arg10[%c0_43, %c20] : memref<8x32xf32, #tpu.memory_space<vmem>>, vector<8x4xf32>
    tpu.vector_store %arg10[%c0_43, %c20], %113 {strides = array<i32>} : memref<8x32xf32, #tpu.memory_space<vmem>>, vector<8x4xf32>,
    %115 = vector.extract_strided_slice %6 {offsets = [0, 24], sizes = [8, 4], strides = [1, 1]} : vector<8x32xbf16> to vector<8x4xbf16>
    %116 = vector.extract_strided_slice %9 {offsets = [0, 24], sizes = [8, 4], strides = [1, 1]} : vector<8x32xbf16> to vector<8x4xbf16>
    %117 = vector.extract_strided_slice %12 {offsets = [0, 24], sizes = [8, 4], strides = [1, 1]} : vector<8x32xbf16> to vector<8x4xbf16>
    %cst_44 = arith.constant dense<0.000000e+00> : vector<8x8xf32>
    %118 = tpu.matmul %115, %116, %cst_44 {dimension_numbers = #tpu.dot_dimension_numbers<[1], [1], [0], [0], [0, 0, 1, 0], [], []>} : vector<8x4xbf16>, vector<8x4xbf16>, vector<8x8xf32> -> vector<8x8xf32>
    %cst_45 = arith.constant dense<0xFF800000> : vector<8xf32>
    %119 = vector.multi_reduction <maximumf>, %118, %cst_45 [1] : vector<8x8xf32> to vector<8xf32>
    %120 = vector.shape_cast %119 : vector<8xf32> to vector<8x1xf32>
    %121 = vector.broadcast %120 : vector<8x1xf32> to vector<8x8xf32>
    %122 = arith.subf %118, %121 : vector<8x8xf32>
    %123 = math.exp %122 : vector<8x8xf32>
    %cst_46 = arith.constant dense<0.000000e+00> : vector<8xf32>
    %124 = vector.multi_reduction <add>, %123, %cst_46 [1] : vector<8x8xf32> to vector<8xf32>
    %125 = vector.shape_cast %124 : vector<8xf32> to vector<8x1xf32>
    %126 = tpu.reciprocal %125 {approx = true} : vector<8x1xf32> -> vector<8x1xf32>
    %127 = vector.broadcast %126 : vector<8x1xf32> to vector<8x8xf32>
    %128 = arith.mulf %123, %127 : vector<8x8xf32>
    %129 = arith.truncf %128 : vector<8x8xf32> to vector<8x8xbf16>
    %cst_47 = arith.constant dense<0.000000e+00> : vector<8x4xf32>
    %130 = tpu.matmul %129, %117, %cst_47 {dimension_numbers = #tpu.dot_dimension_numbers<[1], [0], [0], [1], [0, 0, 1, 1], [], []>} : vector<8x8xbf16>, vector<8x4xbf16>, vector<8x4xf32> -> vector<8x4xf32>
    %c0_48 = arith.constant 0 : index
    %c24 = arith.constant 24 : index
    %131 = vector.load %arg10[%c0_48, %c24] : memref<8x32xf32, #tpu.memory_space<vmem>>, vector<8x4xf32>
    tpu.vector_store %arg10[%c0_48, %c24], %130 {strides = array<i32>} : memref<8x32xf32, #tpu.memory_space<vmem>>, vector<8x4xf32>,
    %132 = vector.extract_strided_slice %6 {offsets = [0, 28], sizes = [8, 4], strides = [1, 1]} : vector<8x32xbf16> to vector<8x4xbf16>
    %133 = vector.extract_strided_slice %9 {offsets = [0, 28], sizes = [8, 4], strides = [1, 1]} : vector<8x32xbf16> to vector<8x4xbf16>
    %134 = vector.extract_strided_slice %12 {offsets = [0, 28], sizes = [8, 4], strides = [1, 1]} : vector<8x32xbf16> to vector<8x4xbf16>
    %cst_49 = arith.constant dense<0.000000e+00> : vector<8x8xf32>
    %135 = tpu.matmul %132, %133, %cst_49 {dimension_numbers = #tpu.dot_dimension_numbers<[1], [1], [0], [0], [0, 0, 1, 0], [], []>} : vector<8x4xbf16>, vector<8x4xbf16>, vector<8x8xf32> -> vector<8x8xf32>
    %cst_50 = arith.constant dense<0xFF800000> : vector<8xf32>
    %136 = vector.multi_reduction <maximumf>, %135, %cst_50 [1] : vector<8x8xf32> to vector<8xf32>
    %137 = vector.shape_cast %136 : vector<8xf32> to vector<8x1xf32>
    %138 = vector.broadcast %137 : vector<8x1xf32> to vector<8x8xf32>
    %139 = arith.subf %135, %138 : vector<8x8xf32>
    %140 = math.exp %139 : vector<8x8xf32>
    %cst_51 = arith.constant dense<0.000000e+00> : vector<8xf32>
    %141 = vector.multi_reduction <add>, %140, %cst_51 [1] : vector<8x8xf32> to vector<8xf32>
    %142 = vector.shape_cast %141 : vector<8xf32> to vector<8x1xf32>
    %143 = tpu.reciprocal %142 {approx = true} : vector<8x1xf32> -> vector<8x1xf32>
    %144 = vector.broadcast %143 : vector<8x1xf32> to vector<8x8xf32>
    %145 = arith.mulf %140, %144 : vector<8x8xf32>
    %146 = arith.truncf %145 : vector<8x8xf32> to vector<8x8xbf16>
    %cst_52 = arith.constant dense<0.000000e+00> : vector<8x4xf32>
    %147 = tpu.matmul %146, %134, %cst_52 {dimension_numbers = #tpu.dot_dimension_numbers<[1], [0], [0], [1], [0, 0, 1, 1], [], []>} : vector<8x8xbf16>, vector<8x4xbf16>, vector<8x4xf32> -> vector<8x4xf32>
    %c0_53 = arith.constant 0 : index
    %c28 = arith.constant 28 : index
    %148 = vector.load %arg10[%c0_53, %c28] : memref<8x32xf32, #tpu.memory_space<vmem>>, vector<8x4xf32>
    tpu.vector_store %arg10[%c0_53, %c28], %147 {strides = array<i32>} : memref<8x32xf32, #tpu.memory_space<vmem>>, vector<8x4xf32>,
    %c0_54 = arith.constant 0 : index
    %c0_55 = arith.constant 0 : index
    %149 = vector.load %arg10[%c0_54, %c0_55] : memref<8x32xf32, #tpu.memory_space<vmem>>, vector<8x32xf32>
    %150 = arith.truncf %149 : vector<8x32xf32> to vector<8x32xbf16>
    %c0_56 = arith.constant 0 : index
    %c0_57 = arith.constant 0 : index
    %151 = vector.load %arg7[%c0_56, %c0_57] : memref<32x32xbf16, #tpu.memory_space<vmem>>, vector<32x32xbf16>
    %cst_58 = arith.constant dense<0.000000e+00> : vector<8x32xf32>
    %152 = tpu.matmul %150, %151, %cst_58 {dimension_numbers = #tpu.dot_dimension_numbers<[1], [0], [0], [1], [0, 0, 1, 1], [], []>} : vector<8x32xbf16>, vector<32x32xbf16>, vector<8x32xf32> -> vector<8x32xf32>
    %c0_59 = arith.constant 0 : index
    %c0_60 = arith.constant 0 : index
    %153 = vector.load %arg8[%c0_59, %c0_60] : memref<1x32xf32, #tpu.memory_space<vmem>>, vector<1x32xf32>
    %154 = vector.broadcast %153 : vector<1x32xf32> to vector<8x32xf32>
    %155 = arith.addf %152, %154 : vector<8x32xf32>
    %c0_61 = arith.constant 0 : index
    %c0_62 = arith.constant 0 : index
    %c0_63 = arith.constant 0 : index
    %156 = vector.load %arg9[%c0_61, %c0_62, %c0_63] : memref<1x8x32xf32, #tpu.memory_space<vmem>>, vector<1x8x32xf32>
    %157 = vector.shape_cast %156 : vector<1x8x32xf32> to vector<8x32xf32>
    %158 = vector.shape_cast %155 : vector<8x32xf32> to vector<1x8x32xf32>
    tpu.vector_store %arg9[%c0_61, %c0_62, %c0_63], %158 {strides = array<i32>} : memref<1x8x32xf32, #tpu.memory_space<vmem>>, vector<1x8x32xf32>,
    return
  }
  func.func @transform_0(%arg0: i32, %arg1: i32) -> (i32, i32, i32) {
    %c0_i32 = arith.constant 0 : i32
    %c0_i32_0 = arith.constant 0 : i32
    return %arg0, %arg1, %c0_i32 : i32, i32, i32
  }
  func.func @transform_1(%arg0: i32, %arg1: i32) -> (i32, i32, i32) {
    %c0_i32 = arith.constant 0 : i32
    %c0_i32_0 = arith.constant 0 : i32
    %c0_i32_1 = arith.constant 0 : i32
    return %arg0, %c0_i32, %c0_i32_0 : i32, i32, i32
  }
  func.func @transform_2(%arg0: i32, %arg1: i32) -> (i32, i32) {
    %c0_i32 = arith.constant 0 : i32
    %c0_i32_0 = arith.constant 0 : i32
    %c0_i32_1 = arith.constant 0 : i32
    return %c0_i32, %c0_i32_0 : i32, i32
  }
  func.func @transform_3(%arg0: i32, %arg1: i32) -> (i32, i32) {
    %c0_i32 = arith.constant 0 : i32
    %c0_i32_0 = arith.constant 0 : i32
    %c0_i32_1 = arith.constant 0 : i32
    return %c0_i32, %c0_i32_0 : i32, i32
  }
  func.func @transform_4(%arg0: i32, %arg1: i32) -> (i32, i32) {
    %c0_i32 = arith.constant 0 : i32
    %c0_i32_0 = arith.constant 0 : i32
    %c0_i32_1 = arith.constant 0 : i32
    return %c0_i32, %c0_i32_0 : i32, i32
  }
  func.func @transform_5(%arg0: i32, %arg1: i32) -> (i32, i32) {
    %c0_i32 = arith.constant 0 : i32
    %c0_i32_0 = arith.constant 0 : i32
    %c0_i32_1 = arith.constant 0 : i32
    return %c0_i32, %c0_i32_0 : i32, i32
  }
  func.func @transform_6(%arg0: i32, %arg1: i32) -> (i32, i32) {
    %c0_i32 = arith.constant 0 : i32
    %c0_i32_0 = arith.constant 0 : i32
    %c0_i32_1 = arith.constant 0 : i32
    return %c0_i32, %c0_i32_0 : i32, i32
  }
  func.func @transform_7(%arg0: i32, %arg1: i32) -> (i32, i32, i32) {
    %c0_i32 = arith.constant 0 : i32
    %c0_i32_0 = arith.constant 0 : i32
    return %arg0, %arg1, %c0_i32 : i32, i32, i32
  }
}

</mosaic_0001>

<bundles_post_ra>
// kernel: tpu_custom_call.1
= control target key start
LH: loop header
LB: loop body
LE: loop exit
PB: predicated region body
PF: predicated region fallthrough
CT: control target
= control target key end

     0   :  { %s2896_s0 = inlined_call_operand.hbm [shape: bf16[2,8,32], index: 0, kind: input, shape index: {}]   ;;  %s2897_s1 = inlined_call_operand.hbm [shape: bf16[2,8,32], index: 1, kind: input, shape index: {}]   ;;  %s2898_s2 = inlined_call_operand.hbm [shape: bf16[32,32], index: 2, kind: input, shape index: {}]   ;;  %s2899_s3 = inlined_call_operand.hbm [shape: bf16[32,32], index: 3, kind: input, shape index: {}]   ;;  %s2900_s4 = inlined_call_operand.hbm [shape: bf16[32,32], index: 4, kind: input, shape index: {}]   ;;  %s2901_s5 = inlined_call_operand.vmem [shape: bf16[32,32], index: 5, kind: input, shape index: {}]   ;;  %s2902_s6 = inlined_call_operand.vmem [shape: f32[1,32], index: 6, kind: input, shape index: {}]   ;;  %s2903_s7 = inlined_call_operand.hbm [shape: f32[2,8,32], index: 7, kind: output, shape index: {}]  }
   0x1   :  { %2911 = sst [smem:[#allocation20_spill]] %s2898_s2 }
   0x2   :  { %2912 = sst [smem:[#allocation21_spill]] %s2899_s3 }
   0x3   :  { %2913 = sst [smem:[#allocation22_spill]] %s2900_s4 }
   0x4   :  { %2914 = sst [smem:[#allocation23_spill]] %s2903_s7 }
   0x5   :  { %12 = vsyncpa [#allocation4], 0 }
   0x6   :  { %14 = vsyncpa [#allocation4 + $0x1], 0 }
   0x7   :  { %15 = vsyncpa [#allocation7], 0 }
   0x8   :  { %17 = vsyncpa [#allocation7 + $0x1], 0 }
   0x9   :  { %18 = vsyncpa [#allocation10], 0 }
   0xa   :  { %19 = vsyncpa [#allocation5], 0 }
   0xb   :  { %21 = vsyncpa [#allocation5 + $0x1], 0  ;;  %s2393_s24 = smov 0   ;;  %s2395_s25 = smov 0  }
   0xc   :  { %s2397_s26 = smov 0   ;;  %s2399_s27 = smov 0  }
   0xd   :  { %s2401_s28 = smov 0   ;;  %s2403_s29 = smov 0  }
   0xe LB: > { %2915 = sst [smem:[#allocation18_spill]] %s2307_s24  ;;  %s2424_s30 = sadd.s32 4294967295, %s2327_s29   ;;  %s2327_s29 = sphi %s2403_s29, %s27_s29   ;;  %s2323_s28 = sphi %s2401_s28, %s2944_s28   ;;  %s2319_s27 = sphi %s2399_s27, %s2943_s27   ;;  %s2315_s26 = sphi %s2397_s26, %s2942_s26   ;;  %s2311_s25 = sphi %s2395_s25, %s2941_s25   ;;  %s2307_s24 = sphi %s2393_s24, %s2940_s24  }
   0xf   : > { %s1711_s8 = sadd.s32 4294967294, %s2327_s29   ;;  %p61_p0 = scmp.ne.s32.totalorder %s2311_s25, %s2307_s24 }
  0x10   : > { %p2904_p1 = scmp.eq.s32.totalorder %s2424_s30, 0  ;;  %p224_p3 = scmp.eq.s32.totalorder %s1711_s8, 1 }
  0x11   : > { %p1712_p5 = scmp.ge.s32.totalorder %s2327_s29, 1  ;;  %p231_p7 = scmp.lt.s32.totalorder %s2327_s29, 3 }
  0x12   : > { %p2433_p4 = por %p2904_p1, %p61_p0  ;;  %p2438_p6 = por %p224_p3, %p61_p0 }
  0x13   : > { %p2443_p8 = pnand %p1712_p5, %p231_p7  ;;  %s2329_s12 = smov [#allocation8]  }
  0x14   : > { %s2916_s9 = scalar_select %p2433_p4, 1, 0 }
  0x15   : > { %s2917_s10 = scalar_select %p2438_p6, 1, 0 }
  0x16   : > { %s2919_s11 = scalar_select %p2443_p8, 1, 0 }
  0x17   : > { %2918 = sst [smem:[#allocation19_spill]] %s2917_s10  ;;  %s243_s13 = sshll.u32 %s2329_s12, 4  ;;  %s2447_s13 = int_to_ptr.vmem [resolvable:$true] %s243_s13 }
  0x18   : > { %p1951_p9 = pneg %p2443_p8  ;;  %s2330_s15 = smov [#allocation9]  }
  0x19   : > { %s256_s16 = sshll.u32 %s2330_s15, 4  ;;  %s2331_s17 = smov [#allocation11]   ;;  %s2458_s16 = int_to_ptr.vmem [resolvable:$true] %s256_s16 }
  0x1a   : > { %p2454_p11 = pnand %p1951_p9, %p2904_p1  ;;  %s2460_s18 = sshll.u32 %s2331_s17, 4  ;;  %s270_s18 = int_to_ptr.vmem [resolvable:$true] %s2460_s18 }
  0x1b   : > { %s2921_s2 = sld [smem:[#allocation20_spill]] }
  0x1c   : > { %p2470_p13 = pneg %p2454_p11 }
  0x21   : > { %s2089_s21 = scalar_lea.hbm %s2921_s2, 256 }
  0x22   : > { %p2090_p12 = scmp.ne.s32.totalorder %s2921_s2, %s2089_s21  ;;  %p2096_p5 = scmp.lt.u32.totalorder %s2089_s21, %s2921_s2 }
  0x24   : > { %p2092_p0 = pnand %p2470_p13, %p2090_p12 }
  0x26   : > { %p2093_p3 = pneg %p2092_p0 }
  0x28   : > { %p2098_p7 = pnand %p2096_p5, %p2093_p3 }
  0x2a   : > { %2101 = shalt.err (!%p2098_p7)
}
  0x2b   : > { %s2102_s17 = scalar_lea.vmem %s2447_s13, 256  ;;  %p2110_p2 = scmp.lt.s32.totalorder %s2447_s13, %s2447_s13 }
  0x2c   : > { %p2103_p9 = scmp.ne.s32.totalorder %s2447_s13, %s2102_s17  ;;  %p2111_p6 = scmp.lt.s32.totalorder %s2102_s17, %s2102_s17 }
  0x2e   : > { %p2105_p10 = pnand %p2103_p9, %p2470_p13  ;;  %p2112_p12 = por %p2111_p6, %p2110_p2 }
  0x30   : > { %p2106_p1 = pneg %p2105_p10 }
  0x32   : > { %p2113_p0 = pnand %p2112_p12, %p2106_p1 }
  0x34   : > { %2116 = shalt.err (!%p2113_p0)
}
  0x35   : > { %s2332_s19 = smov 64   ;;  %s2333_s20 = smov 4  }
  0x36   : > { %1954 = dma.hbm_to_vmem [thread:$0]  (!%p2454_p11), %s2921_s2, 256, %s2447_s13, [#allocation7], %s2332_s19, %s2332_s19, %s2333_s20  }
  0x37   : > { %s2923_s3 = sld [smem:[#allocation21_spill]] }
  0x3d   : > { %s2117_s15 = scalar_lea.hbm %s2923_s3, 256 }
  0x3e   : > { %p2118_p1 = scmp.ne.s32.totalorder %s2923_s3, %s2117_s15  ;;  %p2124_p10 = scmp.lt.u32.totalorder %s2117_s15, %s2923_s3 }
  0x40   : > { %p2120_p2 = pnand %p2118_p1, %p2470_p13 }
  0x42   : > { %p2121_p6 = pneg %p2120_p2 }
  0x44   : > { %p2126_p3 = pnand %p2124_p10, %p2121_p6 }
  0x46   : > { %2129 = shalt.err (!%p2126_p3)
}
  0x47   : > { %s2130_s13 = scalar_lea.vmem %s2458_s16, 256  ;;  %p2138_p12 = scmp.lt.s32.totalorder %s2458_s16, %s2458_s16 }
  0x48   : > { %p2131_p5 = scmp.ne.s32.totalorder %s2458_s16, %s2130_s13  ;;  %p2139_p0 = scmp.lt.s32.totalorder %s2130_s13, %s2130_s13 }
  0x4a   : > { %p2133_p7 = pnand %p2131_p5, %p2470_p13  ;;  %p2140_p1 = por %p2139_p0, %p2138_p12 }
  0x4c   : > { %p2134_p9 = pneg %p2133_p7 }
  0x4e   : > { %p2141_p2 = pnand %p2140_p1, %p2134_p9 }
  0x50   : > { %2144 = shalt.err (!%p2141_p2)
}
  0x51   : > { %1957 = dma.hbm_to_vmem [thread:$0]  (!%p2454_p11), %s2923_s3, 256, %s2458_s16, [#allocation10], %s2332_s19, %s2332_s19, %s2333_s20  }
  0x52   : > { %s2924_s4 = sld [smem:[#allocation22_spill]] }
  0x58   : > { %s2145_s22 = scalar_lea.hbm %s2924_s4, 256 }
  0x59   : > { %p2146_p6 = scmp.ne.s32.totalorder %s2924_s4, %s2145_s22  ;;  %p2152_p5 = scmp.lt.u32.totalorder %s2145_s22, %s2924_s4 }
  0x5b   : > { %p2148_p10 = pnand %p2146_p6, %p2470_p13 }
  0x5d   : > { %p2149_p3 = pneg %p2148_p10 }
  0x5f   : > { %p2154_p7 = pnand %p2152_p5, %p2149_p3 }
  0x61   : > { %2157 = shalt.err (!%p2154_p7)
}
  0x62   : > { %s2158_s13 = scalar_lea.vmem %s270_s18, 256  ;;  %p2166_p1 = scmp.lt.s32.totalorder %s270_s18, %s270_s18 }
  0x63   : > { %p2159_p9 = scmp.ne.s32.totalorder %s270_s18, %s2158_s13  ;;  %p2167_p2 = scmp.lt.s32.totalorder %s2158_s13, %s2158_s13 }
  0x65   : > { %p2161_p12 = pnand %p2159_p9, %p2470_p13  ;;  %p2168_p4 = por %p2167_p2, %p2166_p1 }
  0x67   : > { %p2162_p0 = pneg %p2161_p12 }
  0x69   : > { %p2169_p8 = pnand %p2168_p4, %p2162_p0 }
  0x6b   : > { %2172 = shalt.err (!%p2169_p8)
}
  0x6c   : > { %1960 = dma.hbm_to_vmem [thread:$0]  (!%p2454_p11), %s2924_s4, 256, %s270_s18, [#allocation10], %s2332_s19, %s2332_s19, %s2333_s20  }
  0x6d   : > { %s48_s8 = sadd.s32 1, %s2315_s26  ;;  %s39_s14 = sadd.s32 1, %s2323_s28 }
  0x6e   : > { %p55_p4 = scmp.ne.s32.totalorder %s2315_s26, %s2311_s25  ;;  %p41_p8 = scmp.ge.s32.totalorder %s39_s14, 2 }
  0x6f   : > { %p56_p13 = scmp.eq.s32.totalorder %s2327_s29, 0  ;;  %p2925_p6 = scmp.eq.s32.totalorder %s2424_s30, 1 }
  0x70   : > { %p1975_p3 = scmp.lt.s32.totalorder %s2327_s29, 2  ;;  %s2946_s14 = smov (%p41_p8, %s39_s14), 0 }
  0x71   : > { %p2549_p10 = por %p2925_p6, %p55_p4  ;;  %p57_p5 = por %p56_p13, %p55_p4 }
  0x72   : > { %s289_s10 = sand.u32 1, %s2315_s26   ;;  %s43_s21 = ssub.s32 %s2323_s28, %s2946_s14 }
  0x73   : > { %s2926_s24 = scalar_select %p2549_p10, 1, 0 }
  0x74   : > { %p46_p11 = scmp.eq.s32.totalorder %s43_s21, 0  ;;  %s2559_s18 = sshll.u32 %s289_s10, 2 }
  0x75   : > { %s1718_s19 = sshll.u32 %s2323_s28, 6  ;;  %s293_s15 = scalar_lea.vmem [#allocation3], %s2559_s18 }
  0x76   : > { %s2563_s20 = scalar_select %p46_p11, %s2315_s26, %s48_s8  }
  0x77   : > { %s2568_s12 = scalar_lea.hbm %s2896_s0, %s1718_s19  ;;  %s301_s17 = sshll.u32 %s293_s15, 4  ;;  %s2571_s17 = int_to_ptr.vmem [resolvable:$true] %s301_s17 }
  0x78   : > { %p2575_p7 = pnand %p1975_p3, %p57_p5  ;;  %s2582_s8 = scalar_lea.hbm %s2897_s1, %s1718_s19 }
  0x79   : > { %s308_s21 = sand.u32 1, %s2327_s29   ;;  %s290_s22 = scalar_lea.sflag [#allocation4], %s289_s10 }
  0x7a   : > { %s2173_s23 = scalar_lea.hbm %s2568_s12, 64  ;;  %p2175_p12 = pneg %p2575_p7 }
  0x7b   : > { %p2174_p9 = scmp.ne.s32.totalorder %s2568_s12, %s2173_s23  ;;  %s2178_s3 = scalar_lea.hbm %s2896_s0, 128 }
  0x7c   : > { %p2179_p2 = scmp.lt.u32.totalorder %s2568_s12, %s2896_s0  ;;  %p2180_p4 = scmp.lt.u32.totalorder %s2178_s3, %s2173_s23 }
  0x7d   : > { %p2176_p0 = pnand %p2175_p12, %p2174_p9  ;;  %p2182_p13 = scmp.lt.u32.totalorder %s2173_s23, %s2568_s12 }
  0x7e   : > { %p2181_p8 = por %p2180_p4, %p2179_p2 }
  0x7f   : > { %p2177_p1 = pneg %p2176_p0 }
  0x80   : > { %p2183_p6 = por %p2182_p13, %p2181_p8 }
  0x82   : > { %p2184_p3 = pnand %p2183_p6, %p2177_p1 }
  0x84   : > { %2187 = shalt.err (!%p2184_p3)
}
  0x85   : > { %s2188_s10 = scalar_lea.vmem %s2571_s17, 64  ;;  %s2334_s2 = smov [#allocation3]  }
  0x86   : > { %p2189_p5 = scmp.ne.s32.totalorder %s2571_s17, %s2188_s10  ;;  %s2193_s19 = sshll.u32 %s2334_s2, 4  ;;  %s2194_s19 = int_to_ptr.vmem [resolvable:$false] %s2193_s19 }
  0x87   : > { %s2195_s4 = scalar_lea.vmem %s2194_s19, 128  ;;  %p2196_p0 = scmp.lt.s32.totalorder %s2571_s17, %s2194_s19 }
  0x88   : > { %p2191_p11 = pnand %p2189_p5, %p2175_p12  ;;  %p2197_p2 = scmp.lt.s32.totalorder %s2195_s4, %s2188_s10 }
  0x8a   : > { %p2192_p9 = pneg %p2191_p11  ;;  %p2198_p4 = por %p2197_p2, %p2196_p0 }
  0x8c   : > { %p2199_p8 = pnand %p2198_p4, %p2192_p9 }
  0x8e   : > { %2202 = shalt.err (!%p2199_p8)
}
  0x8f   : > { %1964 = dma.hbm_to_vmem [thread:$0]  (!%p2575_p7), %s2568_s12, 64, %s2571_s17, %s290_s22  }
  0x90   : > { %s312_s3 = scalar_lea.vmem [#allocation6], %s2559_s18  ;;  %s309_s23 = scalar_lea.sflag [#allocation7], %s308_s21 }
  0x91   : > { %s319_s7 = sshll.u32 %s312_s3, 4  ;;  %s2203_s15 = scalar_lea.hbm %s2582_s8, 64  ;;  %s320_s7 = int_to_ptr.vmem [resolvable:$true] %s319_s7 }
  0x92   : > { %p2204_p1 = scmp.ne.s32.totalorder %s2582_s8, %s2203_s15  ;;  %s2208_s2 = scalar_lea.hbm %s2897_s1, 128 }
  0x93   : > { %p2209_p3 = scmp.lt.u32.totalorder %s2582_s8, %s2897_s1  ;;  %p2210_p5 = scmp.lt.u32.totalorder %s2208_s2, %s2203_s15 }
  0x94   : > { %p2206_p13 = pnand %p2204_p1, %p2175_p12  ;;  %p2212_p9 = scmp.lt.u32.totalorder %s2203_s15, %s2582_s8 }
  0x95   : > { %p2211_p11 = por %p2210_p5, %p2209_p3 }
  0x96   : > { %p2207_p6 = pneg %p2206_p13 }
  0x97   : > { %p2213_p0 = por %p2212_p9, %p2211_p11 }
  0x99   : > { %p2214_p2 = pnand %p2213_p0, %p2207_p6 }
  0x9b   : > { %2217 = shalt.err (!%p2214_p2)
}
  0x9c   : > { %s2218_s18 = scalar_lea.vmem %s320_s7, 64  ;;  %s2335_s12 = smov [#allocation6]  }
  0x9d   : > { %p2219_p4 = scmp.ne.s32.totalorder %s320_s7, %s2218_s18  ;;  %s2223_s17 = sshll.u32 %s2335_s12, 4  ;;  %s2224_s17 = int_to_ptr.vmem [resolvable:$false] %s2223_s17 }
  0x9e   : > { %s2225_s21 = scalar_lea.vmem %s2224_s17, 128  ;;  %p2226_p13 = scmp.lt.s32.totalorder %s320_s7, %s2224_s17 }
  0x9f   : > { %p2221_p8 = pnand %p2219_p4, %p2175_p12  ;;  %p2227_p10 = scmp.lt.s32.totalorder %s2225_s21, %s2218_s18 }
  0xa1   : > { %p2222_p1 = pneg %p2221_p8  ;;  %p2228_p3 = por %p2227_p10, %p2226_p13 }
  0xa3   : > { %p2229_p5 = pnand %p2228_p3, %p2222_p1 }
  0xa5   : > { %2232 = shalt.err (!%p2229_p5)
}
  0xa6   : > { %1967 = dma.hbm_to_vmem [thread:$0]  (!%p2575_p7), %s2582_s8, 64, %s320_s7, %s309_s23  }
  0xa7   : > { %p2928_p6 = scmp.ne.s32.totalorder %s2919_s11, 0 }
  0xa8   : > { %s2635_s22 = sand.u32 (!%p2928_p6), 1, %s2311_s25   ;;  %p2929_p12 = scmp.ne.s32.totalorder (!%p2928_p6), %s2916_s9, 0 }
  0xa9   : > { %328 = sbr.rel (%p2928_p6) target bundleno = 1712 (0x6b0), region = 48  ;;  %s1722_s3 = sshll.u32 (!%p2928_p6), %s2635_s22, 2 }
  0xaa   : > { %s331_s15 = scalar_lea.sflag (!%p2928_p6), [#allocation4], %s2635_s22  ;;  %s334_s16 = scalar_lea.vmem (!%p2928_p6), [#allocation3], %s1722_s3 }
  0xb0   : > { %2286 = dma.done.wait (%p2929_p12), %s331_s15, 64  }
  0xb1   : > { %2288 = vsyncadd (%p2929_p12), %s331_s15, 4294967232  ;;  %s339_s13 = sand.u32 1, %s2424_s30   ;;  %s343_s11 = scalar_lea.vmem [#allocation6], %s1722_s3 }
  0xb2   : > { %s340_s8 = scalar_lea.sflag [#allocation7], %s339_s13 }
  0xb3   : > { %2290 = dma.done.wait (%p2929_p12), %s340_s8, 64  }
  0xb4   : > { %2292 = vsyncadd (%p2929_p12), %s340_s8, 4294967232  ;;  %p2930_p10 = scmp.eq.s32.totalorder %s2424_s30, 0 }
  0xb6   : > { %2294 = dma.done.wait (%p2930_p10), [#allocation7], 256   ;;  %p2931_p7 = pmov %p2930_p10 }
  0xb8   : > { %2296 = vsyncadd (%p2931_p7), [#allocation7], 4294967040  ;;  %p2932_p11 = pmov %p2931_p7 }
  0xb9   : > { %p2933_p9 = pmov %p2931_p7 }
  0xba   : > { %2298 = dma.done.wait (%p2932_p11), [#allocation10], 512  }
  0xbb   : > { %2300 = vsyncadd (%p2933_p9), [#allocation10], 4294966784  ;;  %v2336_v0 = vmov 0.0   ;;  %vm2337_vm0 = vmmov 0   ;;  %v2049_v1 = vld [vmem:[#allocation9] sm:$0xff]   ;;  %v2050_v2 = vld [vmem:[#allocation8] sm:$0xff]  }
  0xbc   : > { %1813 = vmatprep.subr.bf16.mxu1 %v2336_v0  ;;  %1805 = vmatprep.subr.bf16.mxu0 %v2336_v0  ;;  %v2051_v3 = vld [vmem:[#allocation9 + $0x8] sm:$0xff]   ;;  %vm410_vm1 = vcmask 261120   ;;  %v2052_v5 = vld [vmem:[#allocation8 + $0x8] sm:$0xff]   ;;  %v392_v6 = vld [vmem:[%s334_s16] sm:$0xf]  ;;  %vm572_vm2 = vcmask 31744  }
  0xbd   : > { %1817 = vmatprep.mubr.msk.bf16.mxu1 %vm2337_vm0, %v2336_v0  ;;  %1809 = vmatprep.mubr.msk.bf16.mxu0 %vm2337_vm0, %v2336_v0  ;;  %v393_v4 = vld [vmem:[%s343_s11] sm:$0xf]  ;;  %s2338_s30 = smov 120   ;;  %s2339_s9 = smov 124   ;;  %v2053_v18 = vld [vmem:[#allocation11] sm:$0xff]   ;;  %v2054_v19 = vld [vmem:[#allocation11 + $0x8] sm:$0xff]  }
  0xbe   : > { %1814 = vmatpush3.bf16.msra.mxu1 %v2049_v1  ;;  %1806 = vmatpush3.bf16.msra.mxu0 %v2050_v2  ;;  %s2340_s7 = smov 116   ;;  %s2341_s23 = smov 112   ;;  %vm619_vm3 = vcmask 64512   ;;  %vm635_vm4 = vcmask 1043456   ;;  %vm797_vm5 = vcmask 64544   ;;  %vm913_vm6 = vcmask 97344  }
  0xbf   : > { %1815 = vmatprep.subr.bf16.mxu1 %v2336_v0  ;;  %1807 = vmatprep.subr.bf16.mxu0 %v2336_v0  ;;  %s2342_s10 = smov 108   ;;  %s2343_s2 = smov 104   ;;  %vm1029_vm7 = vcmask 130144   ;;  %vm1145_vm8 = vcmask 162944   ;;  %vm1261_vm9 = vcmask 195744   ;;  %vm1377_vm10 = vcmask 228544  }
  0xc0   : > { %s2344_s19 = smov 100   ;;  %s2345_s4 = smov 4   ;;  %vm1493_vm11 = vcmask 261344  }
  0xc1   : > { %s2346_s18 = smov 8   ;;  %s2347_s12 = smov 12  }
  0xc2   : > { %1816 = vmatpush3.bf16.msra.mxu1 %v2051_v3  ;;  %1808 = vmatpush3.bf16.msra.mxu0 %v2052_v5  ;;  %s2348_s17 = smov 16   ;;  %s2349_s21 = smov 20  }
  0xc3   : > { %1829 = vmatprep.subr.bf16.mxu1 %v2336_v0  ;;  %1821 = vmatprep.subr.bf16.mxu0 %v2336_v0  ;;  %s2350_s8 = smov 24   ;;  %s2351_s11 = smov 28  }
  0xc4   : > { %p2935_p2 = scmp.ne.s32.totalorder %s2926_s24, 0 }
  0xc5   : > { %1818 = vmatmul.mubr.msk.bf16.vlgmr.msra.gmra.mrb[0].mxu1 %vm410_vm1, %v393_v4  ;;  %1810 = vmatmul.mubr.msk.bf16.vlgmr.msra.gmra.mrb[0].mxu0 %vm410_vm1, %v392_v6 }
  0xc6   : > { %1831 = vmatprep.mubr.msk.bf16.mxu1 %vm2337_vm0, %v2336_v0  ;;  %1825 = vmatprep.mubr.msk.bf16.mxu0 %vm2337_vm0, %v2336_v0 }
  0xc7   : > { %1822 = vmatpush3.bf16.msra.mxu0 %v2053_v18 }
  0xc8   : > { %1823 = vmatprep.subr.bf16.mxu0 %v2336_v0 }
  0xcb   : > { %1824 = vmatpush3.bf16.msra.mxu0 %v2054_v19 }
  0xcc   : > { %1835 = vmatprep.subr.bf16.mxu0 %v2336_v0 }
  0xce   : > { %1826 = vmatmul.mubr.msk.bf16.vlgmr.msra.gmra.mrb[4].mxu0 %vm410_vm1, %v393_v4 }
  0xcf   : > { %1837 = vmatprep.mubr.msk.bf16.mxu0 %vm2337_vm0, %v2336_v0 }
 0x198   : > { %v508_v7 = vpop.f32.mrb[0].mxu1  ;;  %v448_v10 = vpop.f32.mrb[0].mxu0 }
 0x199   : > { %v514_v8 = vpack.c.bf16 %v508_v7, %v508_v7  ;;  %v1819_v9 = vpop.f32.mrb[1].mxu1  ;;  %v1811_v12 = vpop.f32.mrb[1].mxu0  ;;  %v454_v14 = vpack.c.bf16 %v448_v10, %v448_v10 }
 0x19a   : > { %v511_v11 = vpop.f32.mrb[2].mxu1  ;;  %v451_v16 = vpop.f32.mrb[2].mxu0 }
 0x19b   : > { %801 = vrot.lane.b32.xlu1 %v514_v8, %s2338_s30  ;;  %684 = vrot.lane.b32.xlu0 %v514_v8, %s2339_s9  ;;  %v1820_v13 = vpop.f32.mrb[3].mxu1  ;;  %v577_v15 = vsel %vm572_vm2, %v514_v8, 0  ;;  %v1812_v17 = vpop.f32.mrb[3].mxu0 }
 0x19c   : > { %1830 = vmatpush3.bf16.xpose.msra.mxu1 %v577_v15 }
 0x19d   : > { %1841 = vmatprep.subr.bf16.mxu1 %v2336_v0 }
 0x19f   : > { %799 = vrot.lane.b32.xlu1 %v454_v14, %s2338_s30  ;;  %681 = vrot.lane.b32.xlu0 %v454_v14, %s2339_s9 }
 0x1a1   : > { %v565_v46 = vpop.f32.mrb[4].mxu0 }
 0x1a2   : > { %v2732_v47 = vpack.c.bf16 %v565_v46, %v565_v46  ;;  %v1827_v48 = vpop.f32.mrb[5].mxu0 }
 0x1a3   : > { %915 = vrot.lane.b32.xlu1 %v454_v14, %s2340_s7  ;;  %917 = vrot.lane.b32.xlu0 %v514_v8, %s2340_s7  ;;  %v568_v49 = vpop.f32.mrb[6].mxu0 }
 0x1a4   : > { %1832 = vmatmul.mubr.msk.bf16.vlgmr.msra.gmra.mrb[4].mxu1 %vm572_vm2, %v454_v14  ;;  %v1828_v50 = vpop.f32.mrb[7].mxu0  ;;  %v637_v51 = vsel %vm635_vm4, %v2732_v47, 0 }
 0x1a5   : > { %1843 = vmatprep.mubr.msk.bf16.mxu1 %vm2337_vm0, %v2336_v0  ;;  %1836 = vmatpush3.bf16.msra.mxu0 %v637_v51 }
 0x1a6   : > { %1847 = vmatprep.subr.bf16.mxu0 %v2336_v0 }
 0x1a7   : > { %1031 = vrot.lane.b32.xlu1 %v454_v14, %s2341_s23  ;;  %1033 = vrot.lane.b32.xlu0 %v514_v8, %s2341_s23 }
 0x1ab   : > { %1147 = vrot.lane.b32.xlu1 %v454_v14, %s2342_s10  ;;  %1149 = vrot.lane.b32.xlu0 %v514_v8, %s2342_s10 }
 0x1af   : > { %1263 = vrot.lane.b32.xlu1 %v454_v14, %s2343_s2  ;;  %1265 = vrot.lane.b32.xlu0 %v514_v8, %s2343_s2 }
 0x1b3   : > { %1379 = vrot.lane.b32.xlu1 %v454_v14, %s2344_s19  ;;  %1381 = vrot.lane.b32.xlu0 %v514_v8, %s2344_s19 }
 0x20d   : > { %v685_v20 = vpop.permute.xlu0 %684  ;;  %v802_v22 = vpop.permute.xlu1 %801 }
 0x20e   : > { %v690_v21 = vsel %vm572_vm2, %v685_v20, 0  ;;  %v807_v24 = vsel %vm572_vm2, %v802_v22, 0 }
 0x20f   : > { %1842 = vmatpush3.bf16.xpose.msra.mxu1 %v690_v21 }
 0x210   : > { %1853 = vmatprep.subr.bf16.mxu1 %v2336_v0 }
 0x211   : > { %v682_v23 = vpop.permute.xlu0 %681  ;;  %v800_v26 = vpop.permute.xlu1 %799 }
 0x215   : > { %v918_v25 = vpop.permute.xlu0 %917  ;;  %v916_v29 = vpop.permute.xlu1 %915 }
 0x216   : > { %1844 = vmatmul.mubr.msk.bf16.vlgmr.msra.gmra.mrb[8].mxu1 %vm572_vm2, %v682_v23  ;;  %v923_v27 = vsel %vm572_vm2, %v918_v25, 0 }
 0x217   : > { %1854 = vmatpush3.bf16.xpose.msra.mxu1 %v807_v24  ;;  %1855 = vmatprep.mubr.msk.bf16.mxu1 %vm2337_vm0, %v2336_v0 }
 0x218   : > { %1865 = vmatprep.subr.bf16.mxu1 %v2336_v0 }
 0x219   : > { %v1034_v28 = vpop.permute.xlu0 %1033  ;;  %v1032_v32 = vpop.permute.xlu1 %1031 }
 0x21a   : > { %v1039_v30 = vsel %vm572_vm2, %v1034_v28, 0 }
 0x21d   : > { %v1150_v31 = vpop.permute.xlu0 %1149  ;;  %v1148_v35 = vpop.permute.xlu1 %1147 }
 0x21e   : > { %1856 = vmatmul.mubr.msk.bf16.vlgmr.msra.gmra.mrb[12].mxu1 %vm572_vm2, %v800_v26  ;;  %v1155_v33 = vsel %vm572_vm2, %v1150_v31, 0 }
 0x21f   : > { %1866 = vmatpush3.bf16.xpose.msra.mxu1 %v923_v27  ;;  %1867 = vmatprep.mubr.msk.bf16.mxu1 %vm2337_vm0, %v2336_v0 }
 0x220   : > { %1877 = vmatprep.subr.bf16.mxu1 %v2336_v0 }
 0x221   : > { %v1266_v34 = vpop.permute.xlu0 %1265  ;;  %v1264_v38 = vpop.permute.xlu1 %1263 }
 0x222   : > { %v1271_v36 = vsel %vm572_vm2, %v1266_v34, 0 }
 0x225   : > { %v1382_v37 = vpop.permute.xlu0 %1381  ;;  %v1380_v40 = vpop.permute.xlu1 %1379 }
 0x226   : > { %1868 = vmatmul.mubr.msk.bf16.vlgmr.msra.gmra.mrb[16].mxu1 %vm572_vm2, %v916_v29  ;;  %v1387_v39 = vsel %vm572_vm2, %v1382_v37, 0 }
 0x227   : > { %1878 = vmatpush3.bf16.xpose.msra.mxu1 %v1039_v30  ;;  %1879 = vmatprep.mubr.msk.bf16.mxu1 %vm2337_vm0, %v2336_v0 }
 0x228   : > { %1889 = vmatprep.subr.bf16.mxu1 %v2336_v0 }
 0x22e   : > { %1880 = vmatmul.mubr.msk.bf16.vlgmr.msra.gmra.mrb[20].mxu1 %vm572_vm2, %v1032_v32 }
 0x22f   : > { %1890 = vmatpush3.bf16.xpose.msra.mxu1 %v1155_v33  ;;  %1891 = vmatprep.mubr.msk.bf16.mxu1 %vm2337_vm0, %v2336_v0 }
 0x230   : > { %1901 = vmatprep.subr.bf16.mxu1 %v2336_v0 }
 0x236   : > { %1892 = vmatmul.mubr.msk.bf16.vlgmr.msra.gmra.mrb[24].mxu1 %vm572_vm2, %v1148_v35 }
 0x237   : > { %1902 = vmatpush3.bf16.xpose.msra.mxu1 %v1271_v36  ;;  %1903 = vmatprep.mubr.msk.bf16.mxu1 %vm2337_vm0, %v2336_v0 }
 0x238   : > { %1913 = vmatprep.subr.bf16.mxu1 %v2336_v0 }
 0x23e   : > { %1904 = vmatmul.mubr.msk.bf16.vlgmr.msra.gmra.mrb[28].mxu1 %vm572_vm2, %v1264_v38 }
 0x23f   : > { %1914 = vmatpush3.bf16.xpose.msra.mxu1 %v1387_v39  ;;  %1915 = vmatprep.mubr.msk.bf16.mxu1 %vm2337_vm0, %v2336_v0 }
 0x240   : > { %1925 = vmatprep.subr.bf16.mxu1 %v2336_v0 }
 0x246   : > { %1916 = vmatmul.mubr.msk.bf16.vlgmr.msra.gmra.mrb[32].mxu1 %vm572_vm2, %v1380_v40 }
 0x247   : > { %1929 = vmatprep.mubr.msk.bf16.mxu1 %vm2337_vm0, %v2336_v0 }
 0x277   : > { %v613_v41 = vpop.f32.mrb[4].mxu1 }
 0x278   : > { %v1833_v42 = vpop.f32.mrb[5].mxu1  ;;  %v620_v43 = vsel %vm619_vm3, %v613_v41, -inf }
 0x279   : > { %621 = vmax.xlane.f32.xlu0 %v620_v43  ;;  %v616_v44 = vpop.f32.mrb[6].mxu1 }
 0x27a   : > { %v1834_v45 = vpop.f32.mrb[7].mxu1 }
 0x2e9   : > { %v726_v52 = vpop.f32.mrb[8].mxu1 }
 0x2ea   : > { %v1845_v53 = vpop.f32.mrb[9].mxu1  ;;  %v732_v54 = vsel %vm619_vm3, %v726_v52, -inf }
 0x2eb   : > { %733 = vmax.xlane.f32.xlu1 %v732_v54  ;;  %v729_v55 = vpop.f32.mrb[10].mxu1 }
 0x2ec   : > { %v1846_v56 = vpop.f32.mrb[11].mxu1 }
 0x2f1   : > { %v843_v57 = vpop.f32.mrb[12].mxu1 }
 0x2f2   : > { %v1857_v58 = vpop.f32.mrb[13].mxu1  ;;  %v849_v59 = vsel %vm619_vm3, %v843_v57, -inf }
 0x2f3   : > { %850 = vmax.xlane.f32.xlu0 %v849_v59  ;;  %v846_v60 = vpop.f32.mrb[14].mxu1 }
 0x2f4   : > { %v1858_v61 = vpop.f32.mrb[15].mxu1 }
 0x2f9   : > { %v959_v62 = vpop.f32.mrb[16].mxu1 }
 0x2fa   : > { %v1869_v63 = vpop.f32.mrb[17].mxu1  ;;  %v965_v1 = vsel %vm619_vm3, %v959_v62, -inf }
 0x2fb   : > { %966 = vmax.xlane.f32.xlu0 %v965_v1  ;;  %v962_v2 = vpop.f32.mrb[18].mxu1 }
 0x2fc   : > { %v1870_v3 = vpop.f32.mrb[19].mxu1 }
 0x301   : > { %v2740_v4 = vpop.f32.mrb[20].mxu1 }
 0x302   : > { %v1881_v5 = vpop.f32.mrb[21].mxu1  ;;  %v1081_v6 = vsel %vm619_vm3, %v2740_v4, -inf }
 0x303   : > { %1082 = vmax.xlane.f32.xlu1 %v1081_v6  ;;  %v1078_v7 = vpop.f32.mrb[22].mxu1 }
 0x304   : > { %v1882_v8 = vpop.f32.mrb[23].mxu1 }
 0x306   : > { %v622_v9 = vpop.xlane.xlu0 %621 }
 0x307   : > { %v623_v10 = vsub.f32 %v613_v41, %v622_v9 }
 0x309   : > { %v624_v11 = vmul.f32 1.442695, %v623_v10  ;;  %v2744_v12 = vpop.f32.mrb[24].mxu1 }
 0x30a   : > { %v1893_v13 = vpop.f32.mrb[25].mxu1  ;;  %v1197_v14 = vsel %vm619_vm3, %v2744_v12, -inf }
 0x30b   : > { %2057 = vpow2.f32 %v624_v11  ;;  %1198 = vmax.xlane.f32.xlu0 %v1197_v14  ;;  %v1194_v15 = vpop.f32.mrb[26].mxu1 }
 0x30c   : > { %v1894_v16 = vpop.f32.mrb[27].mxu1 }
 0x311   : > { %v1307_v17 = vpop.f32.mrb[28].mxu1 }
 0x312   : > { %v1905_v18 = vpop.f32.mrb[29].mxu1  ;;  %v1313_v19 = vsel %vm619_vm3, %v1307_v17, -inf }
 0x313   : > { %1314 = vmax.xlane.f32.xlu1 %v1313_v19  ;;  %v1310_v20 = vpop.f32.mrb[30].mxu1 }
 0x314   : > { %v1906_v21 = vpop.f32.mrb[31].mxu1 }
 0x315   : > { %v2058_v22 = vpop.eup %2057 }
 0x316   : > { %v626_v23 = vsel %vm619_vm3, %v2058_v22, 0.0 }
 0x317   : > { %627 = vadd.xlane.f32.xlu1 %v626_v23 }
 0x319   : > { %v1423_v24 = vpop.f32.mrb[32].mxu1 }
 0x31a   : > { %v1917_v25 = vpop.f32.mrb[33].mxu1  ;;  %v1429_v26 = vsel %vm619_vm3, %v1423_v24, -inf }
 0x31b   : > { %1430 = vmax.xlane.f32.xlu0 %v1429_v26  ;;  %v1426_v27 = vpop.f32.mrb[34].mxu1 }
 0x31c   : > { %v1918_v28 = vpop.f32.mrb[35].mxu1 }
 0x328   : > { %861 = vrot.lane.b32.xlu1 %v2732_v47, %s2338_s30  ;;  %s1727_s30 = sshll.u32 %s2635_s22, 3 }
 0x331   : > { %745 = vrot.lane.b32.xlu0 %v2732_v47, %s2339_s9 }
 0x378   : > { %v734_v29 = vpop.xlane.xlu1 %733 }
 0x379   : > { %v735_v30 = vsub.f32 %v726_v52, %v734_v29 }
 0x37b   : > { %v736_v31 = vmul.f32 1.442695, %v735_v30 }
 0x37d   : > { %2059 = vpow2.f32 %v736_v31 }
 0x380   : > { %v851_v32 = vpop.xlane.xlu0 %850 }
 0x381   : > { %v852_v33 = vsub.f32 %v843_v57, %v851_v32 }
 0x383   : > { %v853_v34 = vmul.f32 1.442695, %v852_v33 }
 0x385   : > { %2061 = vpow2.f32 %v853_v34 }
 0x387   : > { %v2755_v35 = vpop.eup %2059 }
 0x388   : > { %v967_v36 = vpop.xlane.xlu0 %966  ;;  %v738_v37 = vsel %vm619_vm3, %v2755_v35, 0.0 }
 0x389   : > { %v968_v38 = vsub.f32 %v959_v62, %v967_v36  ;;  %739 = vadd.xlane.f32.xlu0 %v738_v37 }
 0x38b   : > { %v969_v39 = vmul.f32 1.442695, %v968_v38 }
 0x38d   : > { %2063 = vpow2.f32 %v969_v39 }
 0x38f   : > { %v2759_v40 = vpop.eup %2061 }
 0x390   : > { %v855_v41 = vsel %vm619_vm3, %v2759_v40, 0.0  ;;  %v1083_v44 = vpop.xlane.xlu1 %1082 }
 0x391   : > { %856 = vadd.xlane.f32.xlu1 %v855_v41  ;;  %v1084_v51 = vsub.f32 %v2740_v4, %v1083_v44 }
 0x393   : > { %v1085_v56 = vmul.f32 1.442695, %v1084_v51 }
 0x397   : > { %v2763_v42 = vpop.eup %2063 }
 0x398   : > { %v971_v43 = vsel %vm619_vm3, %v2763_v42, 0.0  ;;  %v1199_v48 = vpop.xlane.xlu0 %1198 }
 0x399   : > { %972 = vadd.xlane.f32.xlu0 %v971_v43  ;;  %v1200_v57 = vsub.f32 %v2744_v12, %v1199_v48 }
 0x39b   : > { %v1201_v59 = vmul.f32 1.442695, %v1200_v57 }
 0x3a0   : > { %v1315_v45 = vpop.xlane.xlu1 %1314 }
 0x3a1   : > { %v1316_v58 = vsub.f32 %v1307_v17, %v1315_v45 }
 0x3a2   : > { %977 = vrot.lane.b32.xlu1 %v2732_v47, %s2340_s7 }
 0x3a3   : > { %v1317_v61 = vmul.f32 1.442695, %v1316_v58 }
 0x3a4   : > { %v628_v46 = vpop.xlane.xlu1 %627 }
 0x3a5   : > { %2065 = vrcp.f32 %v628_v46 }
 0x3a6   : > { %2067 = vpow2.f32 %v1085_v56 }
 0x3a7   : > { %2069 = vpow2.f32 %v1201_v59 }
 0x3a8   : > { %v1431_v49 = vpop.xlane.xlu0 %1430  ;;  %2071 = vpow2.f32 %v1317_v61  ;;  %v862_v9 = vpop.permute.xlu1 %861 }
 0x3a9   : > { %v1432_v60 = vsub.f32 %v1423_v24, %v1431_v49  ;;  %v867_v14 = vsel %vm635_vm4, %v862_v9, 0  ;;  %v2055_v9 = vld [vmem:[%s2901_s5] sm:$0xff]  }
 0x3aa   : > { %1926 = vmatpush3.bf16.msra.mxu1 %v2055_v9 }
 0x3ab   : > { %v1433_v62 = vmul.f32 1.442695, %v1432_v60  ;;  %1927 = vmatprep.subr.bf16.mxu1 %v2336_v0 }
 0x3ac   : > { %v746_v52 = vpop.permute.xlu0 %745 }
 0x3ad   : > { %v751_v55 = vsel %vm635_vm4, %v746_v52, 0  ;;  %2073 = vpow2.f32 %v1433_v62 }
 0x3af   : > { %1093 = vrot.lane.b32.xlu0 %v2732_v47, %s2341_s23  ;;  %v2066_v50 = vpop.eup %2065  ;;  %s1758_s23 = sshll.u32 %s2319_s27, 7  ;;  %s1565_s27 = scalar_lea.sflag [#allocation5], %s2635_s22 }
 0x3b0   : > { %v630_v53 = vmul.f32 %v2066_v50, %v2058_v22  ;;  %v2068_v63 = vpop.eup %2067 }
 0x3b1   : > { %v1087_v1 = vsel %vm619_vm3, %v2068_v63, 0.0  ;;  %v2070_v2 = vpop.eup %2069 }
 0x3b2   : > { %v631_v54 = vpack.c.bf16 %v630_v53, %v630_v53  ;;  %v2779_v3 = vpop.eup %2071  ;;  %v1203_v4 = vsel %vm619_vm3, %v2070_v2, 0.0 }
 0x3b3   : > { %v1319_v7 = vsel %vm619_vm3, %v2779_v3, 0.0 }
 0x3b4   : > { %1838 = vmatmul.mubr.msk.bf16.vlgmr.msra.gmra.mrb[8].mxu0 %vm619_vm3, %v631_v54 }
 0x3b5   : > { %1848 = vmatpush3.bf16.msra.mxu0 %v751_v55  ;;  %1849 = vmatprep.mubr.msk.bf16.mxu0 %vm2337_vm0, %v2336_v0 }
 0x3b6   : > { %1859 = vmatprep.subr.bf16.mxu0 %v2336_v0 }
 0x3b7   : > { %v2782_v5 = vpop.eup %2073 }
 0x3b8   : > { %v1435_v6 = vsel %vm619_vm3, %v2782_v5, 0.0 }
 0x3c6   : > { %1088 = vadd.xlane.f32.xlu1 %v1087_v1 }
 0x3ca   : > { %1204 = vadd.xlane.f32.xlu1 %v1203_v4 }
 0x3ce   : > { %1436 = vadd.xlane.f32.xlu1 %v1435_v6  ;;  %1320 = vadd.xlane.f32.xlu0 %v1319_v7 }
 0x3df   : > { %1209 = vrot.lane.b32.xlu1 %v2732_v47, %s2342_s10  ;;  %s390_s10 = scalar_lea.vmem [#allocation12], %s1727_s30 }
 0x3e4   : > { %1325 = vrot.lane.b32.xlu0 %v2732_v47, %s2343_s2  ;;  %s1579_s2 = sshll.u32 %s390_s10, 4  ;;  %s2848_s2 = int_to_ptr.vmem [resolvable:$true] %s1579_s2 }
 0x3e8   : > { %1441 = vrot.lane.b32.xlu0 %v2732_v47, %s2344_s19 }
 0x416   : > { %v740_v8 = vpop.xlane.xlu0 %739 }
 0x417   : > { %2075 = vrcp.f32 %v740_v8 }
 0x41e   : > { %v857_v10 = vpop.xlane.xlu1 %856 }
 0x41f   : > { %2077 = vrcp.f32 %v857_v10  ;;  %v2056_v10 = vld [vmem:[%s2901_s5 + $0x8] sm:$0xff]  }
 0x420   : > { %1928 = vmatpush3.bf16.msra.mxu1 %v2056_v10 }
 0x421   : > { %v2076_v11 = vpop.eup %2075 }
 0x422   : > { %v742_v12 = vmul.f32 %v2076_v11, %v2755_v35  ;;  %v978_v17 = vpop.permute.xlu1 %977 }
 0x423   : > { %v983_v19 = vsel %vm635_vm4, %v978_v17, 0 }
 0x424   : > { %v743_v13 = vpack.c.bf16 %v742_v12, %v742_v12 }
 0x426   : > { %v973_v15 = vpop.xlane.xlu0 %972  ;;  %1850 = vmatmul.mubr.msk.bf16.vlgmr.msra.gmra.mrb[12].mxu0 %vm619_vm3, %v743_v13 }
 0x427   : > { %2079 = vrcp.f32 %v973_v15  ;;  %1860 = vmatpush3.bf16.msra.mxu0 %v867_v14  ;;  %1861 = vmatprep.mubr.msk.bf16.mxu0 %vm2337_vm0, %v2336_v0 }
 0x428   : > { %1871 = vmatprep.subr.bf16.mxu0 %v2336_v0 }
 0x429   : > { %v2078_v47 = vpop.eup %2077 }
 0x42a   : > { %v859_v16 = vmul.f32 %v2078_v47, %v2759_v40  ;;  %v1094_v22 = vpop.permute.xlu0 %1093 }
 0x42b   : > { %v1099_v24 = vsel %vm635_vm4, %v1094_v22, 0 }
 0x42c   : > { %v860_v18 = vpack.c.bf16 %v859_v16, %v859_v16 }
 0x42e   : > { %1862 = vmatmul.mubr.msk.bf16.vlgmr.msra.gmra.mrb[16].mxu0 %vm619_vm3, %v860_v18 }
 0x42f   : > { %1872 = vmatpush3.bf16.msra.mxu0 %v983_v19  ;;  %1873 = vmatprep.mubr.msk.bf16.mxu0 %vm2337_vm0, %v2336_v0 }
 0x430   : > { %1883 = vmatprep.subr.bf16.mxu0 %v2336_v0 }
 0x431   : > { %v2080_v20 = vpop.eup %2079 }
 0x432   : > { %v975_v21 = vmul.f32 %v2080_v20, %v2763_v42 }
 0x434   : > { %v976_v23 = vpack.c.bf16 %v975_v21, %v975_v21 }
 0x436   : > { %1874 = vmatmul.mubr.msk.bf16.vlgmr.msra.gmra.mrb[20].mxu0 %vm619_vm3, %v976_v23 }
 0x437   : > { %1884 = vmatpush3.bf16.msra.mxu0 %v1099_v24  ;;  %1885 = vmatprep.mubr.msk.bf16.mxu0 %vm2337_vm0, %v2336_v0 }
 0x438   : > { %1895 = vmatprep.subr.bf16.mxu0 %v2336_v0 }
 0x453   : > { %v1089_v25 = vpop.xlane.xlu1 %1088 }
 0x454   : > { %2081 = vrcp.f32 %v1089_v25 }
 0x457   : > { %v1205_v26 = vpop.xlane.xlu1 %1204 }
 0x458   : > { %2083 = vrcp.f32 %v1205_v26  ;;  %v1753_v26 = vld [vmem:[%s2902_s6] ss:$0 sm:$0xff] }
 0x45b   : > { %v1437_v27 = vpop.xlane.xlu1 %1436  ;;  %v1321_v28 = vpop.xlane.xlu0 %1320 }
 0x45c   : > { %2085 = vrcp.f32 %v1321_v28 }
 0x45d   : > { %2087 = vrcp.f32 %v1437_v27 }
 0x45e   : > { %v2082_v29 = vpop.eup %2081 }
 0x45f   : > { %v1091_v30 = vmul.f32 %v2082_v29, %v2068_v63  ;;  %v1210_v31 = vpop.permute.xlu1 %1209  ;;  %v1326_v36 = vpop.permute.xlu0 %1325 }
 0x460   : > { %v1215_v34 = vsel %vm635_vm4, %v1210_v31, 0  ;;  %v1331_v39 = vsel %vm635_vm4, %v1326_v36, 0 }
 0x461   : > { %v1092_v32 = vpack.c.bf16 %v1091_v30, %v1091_v30 }
 0x462   : > { %v2084_v33 = vpop.eup %2083 }
 0x463   : > { %1886 = vmatmul.mubr.msk.bf16.vlgmr.msra.gmra.mrb[24].mxu0 %vm619_vm3, %v1092_v32  ;;  %v1207_v35 = vmul.f32 %v2084_v33, %v2070_v2  ;;  %v1442_v41 = vpop.permute.xlu0 %1441 }
 0x464   : > { %1896 = vmatpush3.bf16.msra.mxu0 %v1215_v34  ;;  %1897 = vmatprep.mubr.msk.bf16.mxu0 %vm2337_vm0, %v2336_v0  ;;  %v1447_v44 = vsel %vm635_vm4, %v1442_v41, 0 }
 0x465   : > { %1907 = vmatprep.subr.bf16.mxu0 %v2336_v0  ;;  %v1208_v37 = vpack.c.bf16 %v1207_v35, %v1207_v35 }
 0x466   : > { %v2086_v38 = vpop.eup %2085 }
 0x467   : > { %v1323_v40 = vmul.f32 %v2086_v38, %v2779_v3  ;;  %v2088_v43 = vpop.eup %2087 }
 0x468   : > { %v1439_v45 = vmul.f32 %v2088_v43, %v2782_v5 }
 0x469   : > { %v1324_v42 = vpack.c.bf16 %v1323_v40, %v1323_v40 }
 0x46a   : > { %v1440_v46 = vpack.c.bf16 %v1439_v45, %v1439_v45 }
 0x46b   : > { %1898 = vmatmul.mubr.msk.bf16.vlgmr.msra.gmra.mrb[28].mxu0 %vm619_vm3, %v1208_v37 }
 0x46c   : > { %1908 = vmatpush3.bf16.msra.mxu0 %v1331_v39  ;;  %1909 = vmatprep.mubr.msk.bf16.mxu0 %vm2337_vm0, %v2336_v0 }
 0x46d   : > { %1919 = vmatprep.subr.bf16.mxu0 %v2336_v0 }
 0x473   : > { %1910 = vmatmul.mubr.msk.bf16.vlgmr.msra.gmra.mrb[32].mxu0 %vm619_vm3, %v1324_v42 }
 0x474   : > { %1920 = vmatpush3.bf16.msra.mxu0 %v1447_v44  ;;  %1921 = vmatprep.mubr.msk.bf16.mxu0 %vm2337_vm0, %v2336_v0 }
 0x47b   : > { %1922 = vmatmul.mubr.msk.bf16.vlgmr.msra.gmra.mrb[36].mxu0 %vm619_vm3, %v1440_v46 }
 0x487   : > { %v673_v48 = vpop.f32.mrb[8].mxu0 }
 0x488   : > { %679 = vst.msk [vmem:[#allocation2] sm:$0xff] %vm572_vm2, %v673_v48  ;;  %v1839_v49 = vpop.f32.mrb[9].mxu0 }
 0x489   : > { %v676_v50 = vpop.f32.mrb[10].mxu0 }
 0x48a   : > { %v1840_v51 = vpop.f32.mrb[11].mxu0 }
 0x4f9   : > { %v787_v52 = vpop.f32.mrb[12].mxu0 }
 0x4fa   : > { %794 = vrot.lane.b32.xlu1 %v787_v52, %s2345_s4  ;;  %v1851_v53 = vpop.f32.mrb[13].mxu0 }
 0x4fb   : > { %v790_v54 = vpop.f32.mrb[14].mxu0 }
 0x4fc   : > { %v1852_v55 = vpop.f32.mrb[15].mxu0 }
 0x501   : > { %v903_v56 = vpop.f32.mrb[16].mxu0 }
 0x502   : > { %910 = vrot.lane.b32.xlu0 %v903_v56, %s2346_s18  ;;  %v1863_v57 = vpop.f32.mrb[17].mxu0  ;;  %s2934_s18 = sld [smem:[#allocation23_spill]] }
 0x503   : > { %v906_v58 = vpop.f32.mrb[18].mxu0 }
 0x504   : > { %v1864_v59 = vpop.f32.mrb[19].mxu0 }
 0x509   : > { %v1019_v60 = vpop.f32.mrb[20].mxu0 }
 0x50a   : > { %1026 = vrot.lane.b32.xlu1 %v1019_v60, %s2347_s12  ;;  %v1875_v61 = vpop.f32.mrb[21].mxu0  ;;  %s2846_s12 = scalar_lea.hbm %s2934_s18, %s1758_s23 }
 0x50b   : > { %v1022_v62 = vpop.f32.mrb[22].mxu0 }
 0x50c   : > { %v1876_v63 = vpop.f32.mrb[23].mxu0 }
 0x536   : > { %v1135_v1 = vpop.f32.mrb[24].mxu0 }
 0x537   : > { %1142 = vrot.lane.b32.xlu0 %v1135_v1, %s2348_s17  ;;  %v1887_v2 = vpop.f32.mrb[25].mxu0  ;;  %s2233_s17 = scalar_lea.vmem %s2848_s2, 128 }
 0x538   : > { %v1138_v3 = vpop.f32.mrb[26].mxu0  ;;  %p2234_p0 = scmp.ne.s32.totalorder %s2848_s2, %s2233_s17 }
 0x539   : > { %v1888_v4 = vpop.f32.mrb[27].mxu0 }
 0x53a   : > { %p2235_p4 = pnand %p2234_p0, %p2935_p2 }
 0x53c   : > { %p2236_p8 = pneg %p2235_p4 }
 0x53e   : > { %v1251_v5 = vpop.f32.mrb[28].mxu0 }
 0x53f   : > { %1258 = vrot.lane.b32.xlu1 %v1251_v5, %s2349_s21  ;;  %v1899_v6 = vpop.f32.mrb[29].mxu0  ;;  %s2352_s21 = smov [#allocation12]  }
 0x540   : > { %v1254_v7 = vpop.f32.mrb[30].mxu0  ;;  %s2237_s3 = sshll.u32 %s2352_s21, 4  ;;  %s2238_s3 = int_to_ptr.vmem [resolvable:$false] %s2237_s3 }
 0x541   : > { %v1900_v8 = vpop.f32.mrb[31].mxu0  ;;  %s2239_s15 = scalar_lea.vmem %s2238_s3, 256  ;;  %p2240_p1 = scmp.lt.s32.totalorder %s2848_s2, %s2238_s3 }
 0x542   : > { %p2241_p13 = scmp.lt.s32.totalorder %s2239_s15, %s2233_s17 }
 0x544   : > { %p2242_p3 = por %p2241_p13, %p2240_p1 }
 0x546   : > { %v1367_v11 = vpop.f32.mrb[32].mxu0  ;;  %p2243_p5 = pnand %p2242_p3, %p2236_p8 }
 0x547   : > { %1374 = vrot.lane.b32.xlu0 %v1367_v11, %s2350_s8  ;;  %v1911_v12 = vpop.f32.mrb[33].mxu0 }
 0x548   : > { %v1370_v13 = vpop.f32.mrb[34].mxu0 }
 0x549   : > { %v1912_v14 = vpop.f32.mrb[35].mxu0 }
 0x54e   : > { %v1483_v15 = vpop.f32.mrb[36].mxu0 }
 0x54f   : > { %1490 = vrot.lane.b32.xlu1 %v1483_v15, %s2351_s11  ;;  %v1923_v47 = vpop.f32.mrb[37].mxu0 }
 0x550   : > { %v1486_v16 = vpop.f32.mrb[38].mxu0 }
 0x551   : > { %v1924_v17 = vpop.f32.mrb[39].mxu0 }
 0x56c   : > { %v795_v18 = vpop.permute.xlu1 %794 }
 0x56d   : > { %798 = vst.msk [vmem:[#allocation2] sm:$0xff] %vm797_vm5, %v795_v18 }
 0x574   : > { %v911_v19 = vpop.permute.xlu0 %910 }
 0x575   : > { %914 = vst.msk [vmem:[#allocation2] sm:$0xff] %vm913_vm6, %v911_v19 }
 0x57c   : > { %v1027_v0 = vpop.permute.xlu1 %1026 }
 0x57d   : > { %1030 = vst.msk [vmem:[#allocation2] sm:$0xff] %vm1029_vm7, %v1027_v0 }
 0x5a9   : > { %v1143_v20 = vpop.permute.xlu0 %1142 }
 0x5aa   : > { %1146 = vst.msk [vmem:[#allocation2] sm:$0xff] %vm1145_vm8, %v1143_v20 }
 0x5b1   : > { %v1259_v21 = vpop.permute.xlu1 %1258 }
 0x5b2   : > { %1262 = vst.msk [vmem:[#allocation2] sm:$0xff] %vm1261_vm9, %v1259_v21 }
 0x5b9   : > { %v1375_v22 = vpop.permute.xlu0 %1374 }
 0x5ba   : > { %1378 = vst.msk [vmem:[#allocation2] sm:$0xff] %vm1377_vm10, %v1375_v22 }
 0x5c1   : > { %v1491_v23 = vpop.permute.xlu1 %1490 }
 0x5c2   : > { %1494 = vst.msk [vmem:[#allocation2] sm:$0xff] %vm1493_vm11, %v1491_v23 }
 0x5c9   : > { %v1495_v24 = vld [vmem:[#allocation2] sm:$0xff] }
 0x5ca   : > { %v1496_v25 = vpack.c.bf16 %v1495_v24, %v1495_v24 }
 0x5cc   : > { %1930 = vmatmul.mubr.msk.bf16.vlgmr.msra.gmra.mrb[36].mxu1 %vm410_vm1, %v1496_v25 }
 0x69f   : > { %v1557_v27 = vpop.f32.mrb[36].mxu1 }
 0x6a0   : > { %v1558_v28 = vadd.f32 %v1753_v26, %v1557_v27  ;;  %v1931_v29 = vpop.f32.mrb[37].mxu1 }
 0x6a1   : > { %v1560_v30 = vpop.f32.mrb[38].mxu1 }
 0x6a2   : > { %v1932_v31 = vpop.f32.mrb[39].mxu1  ;;  %1563 = vst.msk [vmem:[%s390_s10] sm:$0xff] %vm410_vm1, %v1558_v28 }
 0x6a3   : > { %2246 = shalt.err (!%p2243_p5)
}
 0x6a4   : > { %s2247_s22 = scalar_lea.hbm %s2846_s12, 128  ;;  %s2251_s8 = scalar_lea.hbm %s2934_s18, 256 }
 0x6a5   : > { %p2248_p6 = scmp.ne.s32.totalorder %s2846_s12, %s2247_s22  ;;  %p2252_p7 = scmp.lt.u32.totalorder %s2846_s12, %s2934_s18 }
 0x6a6   : > { %p2253_p11 = scmp.lt.u32.totalorder %s2251_s8, %s2247_s22  ;;  %p2255_p0 = scmp.lt.u32.totalorder %s2247_s22, %s2846_s12 }
 0x6a7   : > { %p2249_p12 = pnand %p2248_p6, %p2935_p2 }
 0x6a8   : > { %p2254_p9 = por %p2253_p11, %p2252_p7 }
 0x6a9   : > { %p2250_p10 = pneg %p2249_p12 }
 0x6aa   : > { %p2256_p4 = por %p2255_p0, %p2254_p9 }
 0x6ac   : > { %p2257_p8 = pnand %p2256_p4, %p2250_p10 }
 0x6ae   : > { %2260 = shalt.err (!%p2257_p8)
}
 0x6af   : > { %1949 = dma.vmem_to_hbm [thread:$0]  (%p2935_p2), %s2848_s2, 128, %s2846_s12, %s1565_s27  }
 0x6b0 PF: > { %s2936_s9 = sld [smem:[#allocation18_spill]]  ;;  %s2937_s7 = sld [smem:[#allocation19_spill]] }
 0x6b1   : > { %p2939_p13 = scmp.ge.s32.totalorder %s2327_s29, 2 }
 0x6b6   : > { %s1591_s23 = sand.u32 1, %s2936_s9   ;;  %p2938_p1 = scmp.ne.s32.totalorder %s2937_s7, 0 }
 0x6b7   : > { %s1592_s10 = scalar_lea.sflag [#allocation5], %s1591_s23 }
 0x6b8   : > { %p1969_p3 = pnand %p2939_p13, %p2938_p1 }
 0x6ba   : > { %2302 = dma.done.wait (!%p1969_p3), %s1592_s10, 128  }
 0x6bb   : > { %2304 = vsyncadd (!%p1969_p3), %s1592_s10, 4294967168  ;;  %s27_s29 = sadd.s32 1, %s2327_s29   ;;  %s2940_s24 = smov %s2311_s25 }
 0x6bc   : > { %p24_p5 = scmp.ge.s32.totalorder %s27_s29, 4   ;;  %s2941_s25 = smov %s2315_s26 }
 0x6bd   : > { %s2942_s26 = smov %s2563_s20  ;;  %s2943_s27 = smov %s2323_s28 }
 0x6be   : > { %s2944_s28 = smov %s2946_s14  ;;  %26 = sbr.rel (!%p24_p5) target bundleno = 14 (0xe), region = 118 }
 0x6c5   :  { %1597 = vsyncpa [#allocation4], 1 }
 0x6c6   :  { %1599 = vsyncpa [#allocation4 + $0x1], 1 }
 0x6c7   :  { %1600 = vsyncpa [#allocation7], 1 }
 0x6c8   :  { %1602 = vsyncpa [#allocation7 + $0x1], 1 }
 0x6c9   :  { %1603 = vsyncpa [#allocation10], 1 }
 0x6ca   :  { %1604 = vsyncpa [#allocation5], 1 }
 0x6cb   :  { %1606 = vsyncpa [#allocation5 + $0x1], 1 }

</bundles_post_ra>
